<compile_context>
chip_gen: v7x
topology: tpu7x:2x2x1
jax: 0.10.0
libtpu: 0.0.40
codegen_flags: <defaults>
</compile_context>

<pallas_src>
import functools

import jax
import jax.numpy as jnp
from jax.experimental import pallas as pl
from jax.experimental.pallas import tpu as pltpu


def _edge_mlp_kernel(idx_ref, rbf_ref, psrc_ref, pdst_ref, w1r_ref, b1_ref,
                     w2_ref, b2_ref, o_ref):
    # idx_ref:  [TP, 4]  int32, row p = [src[2p], dst[2p], src[2p+1], dst[2p+1]]
    # rbf_ref:  [TP, 2*rbf_dim]      row p = [rbf[2p] | rbf[2p+1]]
    # psrc_ref: [N, hid]   = node_feats @ W1[:dim]        (grid-invariant)
    # pdst_ref: [N, hid]   = node_feats @ W1[dim:2*dim]   (grid-invariant)
    # w1r_ref:  [rbf_dim, hid], b1_ref: [1, hid]
    # w2_ref:   [hid, rbf_dim], b2_ref: [1, rbf_dim]
    # o_ref:    [TP, 2*rbf_dim]      row p = [out[2p] | out[2p+1]]
    tp = o_ref.shape[0]
    n_nodes = psrc_ref.shape[0]
    rbf_dim = w2_ref.shape[1]
    cdt = psrc_ref.dtype                      # matmul operand dtype (bf16 or f32)

    idx = idx_ref[...]                        # [TP, 4] int32
    rbf2 = rbf_ref[...]                       # [TP, 2*rbf_dim]
    psrc = psrc_ref[...]
    pdst = pdst_ref[...]
    w1r = w1r_ref[...]
    w2 = w2_ref[...]
    b1 = b1_ref[...]                          # f32
    b2 = b2_ref[...]                          # f32

    iota = jax.lax.broadcasted_iota(jnp.int32, (tp, n_nodes), 1)

    def one_hot(col):
        return (idx[:, col:col + 1] == iota).astype(cdt)      # [TP, N]

    def half(src_col, dst_col, rbf_slice):
        # gather-and-project via one-hot matmuls (MXU), f32 accumulation
        h = (jnp.dot(one_hot(src_col), psrc, preferred_element_type=jnp.float32)
             + jnp.dot(one_hot(dst_col), pdst, preferred_element_type=jnp.float32)
             + jnp.dot(rbf_slice, w1r, preferred_element_type=jnp.float32)
             + b1)
        # numerically-stable softplus: max(x,0) + log1p(exp(-|x|)), in f32
        h = jnp.maximum(h, 0.0) + jnp.log1p(jnp.exp(-jnp.abs(h)))
        o = jnp.dot(h.astype(cdt), w2, preferred_element_type=jnp.float32) + b2
        return o                                               # [TP, rbf_dim] f32

    o_even = half(0, 1, rbf2[:, :rbf_dim])
    o_odd = half(2, 3, rbf2[:, rbf_dim:])
    # 128-lane-dense store: [TP, 2*rbf_dim]
    o_ref[...] = jnp.concatenate([o_even, o_odd], axis=-1).astype(o_ref.dtype)


def _choose_tile_e(E, tile_e, *, min_steps=8, min_tile=256):
    """Large tile to amortize per-step overhead, but keep >= min_steps grid
    steps so the pipeline stays busy and both v7x TensorCores get work."""
    t = max(min_tile, tile_e)
    while t > min_tile and (E + t - 1) // t < min_steps:
        t //= 2
    # packed rows (t // 2) must be a multiple of 8 sublanes -> t multiple of 16
    return max(min_tile, (t // 16) * 16)


def edge_update_pallas(node_feats, edge_feats, src, dst, params, *,
                       tile_e=1024, compute_dtype=jnp.bfloat16):
    """node_feats: [N, dim], edge_feats: [E, rbf_dim], src/dst: [E] int32."""
    w1, b1, w2, b2 = params["w1"], params["b1"], params["w2"], params["b2"]
    E, rbf_dim = edge_feats.shape
    N, dim = node_feats.shape
    in_dim, hid = w1.shape
    assert in_dim == 2 * dim + rbf_dim and w2.shape == (hid, rbf_dim)

    tile_e = _choose_tile_e(E, tile_e)
    tp = tile_e // 2                              # packed rows per grid step

    # --- grid-invariant tables (tiny, O(N) + O(weights), computed once in XLA)
    nf32 = node_feats.astype(jnp.float32)
    p_src = (nf32 @ w1[:dim]).astype(compute_dtype)           # [N, hid]
    p_dst = (nf32 @ w1[dim:2 * dim]).astype(compute_dtype)    # [N, hid]
    w1_rbf = w1[2 * dim:].astype(compute_dtype)               # [rbf_dim, hid]
    w2_c = w2.astype(compute_dtype)                           # [hid, rbf_dim]
    b1_f = b1.astype(jnp.float32).reshape(1, hid)
    b2_f = b2.astype(jnp.float32).reshape(1, rbf_dim)

    # --- pad E to a multiple of tile_e and pack edges two-per-row so both the
    # rbf input block and the output block are 128 lanes wide (lane-dense).
    E_pad = ((E + tile_e - 1) // tile_e) * tile_e
    idx = jnp.stack([src, dst], axis=-1).astype(jnp.int32)    # [E, 2]
    rbf = edge_feats.astype(compute_dtype)                    # [E, rbf_dim]
    if E_pad != E:
        idx = jnp.pad(idx, ((0, E_pad - E), (0, 0)))          # pad edges -> node 0
        rbf = jnp.pad(rbf, ((0, E_pad - E), (0, 0)))
    idx_packed = idx.reshape(E_pad // 2, 4)                   # free row-major reshape
    rbf_packed = rbf.reshape(E_pad // 2, 2 * rbf_dim)

    grid = (E_pad // tile_e,)

    itemsize = jnp.dtype(compute_dtype).itemsize
    flops = int(E_pad) * (4 * N * hid + 4 * rbf_dim * hid)
    transcendentals = int(E_pad) * 2 * hid
    bytes_accessed = (int(E_pad) * (8 + rbf_dim * itemsize + rbf_dim * 4)
                      + (2 * N * hid + rbf_dim * hid + hid * rbf_dim) * itemsize
                      + (hid + rbf_dim) * 4)

    out_packed = pl.pallas_call(
        _edge_mlp_kernel,
        out_shape=jax.ShapeDtypeStruct((E_pad // 2, 2 * rbf_dim), jnp.float32),
        grid_spec=pltpu.PrefetchScalarGridSpec(
            num_scalar_prefetch=0,
            grid=grid,
            in_specs=[
                pl.BlockSpec((tp, 4), lambda i: (i, 0)),               # packed indices
                pl.BlockSpec((tp, 2 * rbf_dim), lambda i: (i, 0)),     # packed rbf
                pl.BlockSpec((N, hid), lambda i: (0, 0)),              # P_src (resident)
                pl.BlockSpec((N, hid), lambda i: (0, 0)),              # P_dst (resident)
                pl.BlockSpec((rbf_dim, hid), lambda i: (0, 0)),        # W1[rbf part]
                pl.BlockSpec((1, hid), lambda i: (0, 0)),              # b1
                pl.BlockSpec((hid, rbf_dim), lambda i: (0, 0)),        # W2
                pl.BlockSpec((1, rbf_dim), lambda i: (0, 0)),          # b2
            ],
            out_specs=pl.BlockSpec((tp, 2 * rbf_dim), lambda i: (i, 0)),
        ),
        compiler_params=pltpu.CompilerParams(
            dimension_semantics=("parallel",),
        ),
        cost_estimate=pl.CostEstimate(
            flops=flops,
            transcendentals=transcendentals,
            bytes_accessed=bytes_accessed,
        ),
    )(idx_packed, rbf_packed, p_src, p_dst, w1_rbf, b1_f, w2_c, b2_f)

    out = out_packed.reshape(E_pad, rbf_dim)    # free row-major reshape back
    return out[:E] if E_pad != E else out


def init_params(key, rbf_dim=64, dim=64):
    in_dim = 2 * dim + rbf_dim
    hid = 2 * dim
    k1, k2 = jax.random.split(key)

    def xavier(k, fan_in, fan_out):
        bound = (6.0 / (fan_in + fan_out)) ** 0.5
        # stored as [fan_in, fan_out] so the forward is x @ W
        return jax.random.uniform(
            k, (fan_in, fan_out), jnp.float32, minval=-bound, maxval=bound)

    return {
        "w1": xavier(k1, in_dim, hid),
        "b1": jnp.zeros((1, hid), jnp.float32),
        "w2": xavier(k2, hid, rbf_dim),
        "b2": jnp.zeros((1, rbf_dim), jnp.float32),
    }


def edge_update_ref(node_feats, edge_feats, src, dst, params):
    x = jnp.concatenate([node_feats[src], node_feats[dst], edge_feats], axis=-1)
    h = x @ params["w1"] + params["b1"]
    h = jax.nn.softplus(h)
    return h @ params["w2"] + params["b2"]


if __name__ == "__main__":
    rbf_dim, dim = 64, 64
    N, E = 16, 128

    key = jax.random.PRNGKey(0)
    kp, kn, ke, ks, kd = jax.random.split(key, 5)

    params = init_params(kp, rbf_dim=rbf_dim, dim=dim)
    node_feats = jax.random.normal(kn, (N, dim), jnp.float32)
    edge_feats = jax.random.normal(ke, (E, rbf_dim), jnp.float32)
    src = jax.random.randint(ks, (E,), 0, N, dtype=jnp.int32)
    dst = jax.random.randint(kd, (E,), 0, N, dtype=jnp.int32)

    ref = edge_update_ref(node_feats, edge_feats, src, dst, params)

    # exact-precision path (f32 MXU operands) — tight check vs. reference
    out_f32 = jax.block_until_ready(
        edge_update_pallas(node_feats, edge_feats, src, dst, params,
                           compute_dtype=jnp.float32))
    assert out_f32.shape == (E, rbf_dim)
    assert jnp.allclose(out_f32, ref, atol=1e-3, rtol=1e-3)

    # default fast path (bf16 MXU operands, f32 accumulation / softplus)
    out = jax.block_until_ready(
        edge_update_pallas(node_feats, edge_feats, src, dst, params))
    assert out.shape == (E, rbf_dim)
    assert jnp.allclose(out, ref, atol=5e-2, rtol=5e-2)

    print("KERNEL_OK")
</pallas_src>

<mosaic_0001>
module attributes {stable_mosaic.version = 11 : i64} {
  func.func @_edge_mlp_kernel(%arg0: i32, %arg1: memref<128x4xi32, #tpu.memory_space<vmem>>, %arg2: memref<128x128xf32, #tpu.memory_space<vmem>>, %arg3: memref<16x128xf32, #tpu.memory_space<vmem>>, %arg4: memref<16x128xf32, #tpu.memory_space<vmem>>, %arg5: memref<64x128xf32, #tpu.memory_space<vmem>>, %arg6: memref<1x128xf32, #tpu.memory_space<vmem>>, %arg7: memref<128x64xf32, #tpu.memory_space<vmem>>, %arg8: memref<1x64xf32, #tpu.memory_space<vmem>>, %arg9: memref<128x128xf32, #tpu.memory_space<vmem>>) attributes {dimension_semantics = [#tpu.dimension_semantics<parallel>], iteration_bounds = array<i64: 1>, scalar_prefetch = 0 : i64, scratch_operands = 0 : i64, tpu.core_type = #tpu.core_type<tc>, window_params = [{transform_indices = @transform_0, window_bounds = array<i64: 128, 4>}, {transform_indices = @transform_1, window_bounds = array<i64: 128, 128>}, {pipeline_mode = #tpu.pipeline_mode<synchronous>, transform_indices = @transform_2, window_bounds = array<i64: 16, 128>}, {pipeline_mode = #tpu.pipeline_mode<synchronous>, transform_indices = @transform_3, window_bounds = array<i64: 16, 128>}, {pipeline_mode = #tpu.pipeline_mode<synchronous>, transform_indices = @transform_4, window_bounds = array<i64: 64, 128>}, {pipeline_mode = #tpu.pipeline_mode<synchronous>, transform_indices = @transform_5, window_bounds = array<i64: 1, 128>}, {pipeline_mode = #tpu.pipeline_mode<synchronous>, transform_indices = @transform_6, window_bounds = array<i64: 128, 64>}, {pipeline_mode = #tpu.pipeline_mode<synchronous>, transform_indices = @transform_7, window_bounds = array<i64: 1, 64>}, {transform_indices = @transform_8, window_bounds = array<i64: 128, 128>}]} {
    %c0 = arith.constant 0 : index
    %c0_0 = arith.constant 0 : index
    %0 = vector.load %arg1[%c0, %c0_0] : memref<128x4xi32, #tpu.memory_space<vmem>>, vector<128x4xi32>
    %c0_1 = arith.constant 0 : index
    %c0_2 = arith.constant 0 : index
    %1 = vector.load %arg2[%c0_1, %c0_2] : memref<128x128xf32, #tpu.memory_space<vmem>>, vector<128x128xf32>
    %c0_3 = arith.constant 0 : index
    %c0_4 = arith.constant 0 : index
    %2 = vector.load %arg3[%c0_3, %c0_4] : memref<16x128xf32, #tpu.memory_space<vmem>>, vector<16x128xf32>
    %c0_5 = arith.constant 0 : index
    %c0_6 = arith.constant 0 : index
    %3 = vector.load %arg4[%c0_5, %c0_6] : memref<16x128xf32, #tpu.memory_space<vmem>>, vector<16x128xf32>
    %c0_7 = arith.constant 0 : index
    %c0_8 = arith.constant 0 : index
    %4 = vector.load %arg5[%c0_7, %c0_8] : memref<64x128xf32, #tpu.memory_space<vmem>>, vector<64x128xf32>
    %c0_9 = arith.constant 0 : index
    %c0_10 = arith.constant 0 : index
    %5 = vector.load %arg7[%c0_9, %c0_10] : memref<128x64xf32, #tpu.memory_space<vmem>>, vector<128x64xf32>
    %c0_11 = arith.constant 0 : index
    %c0_12 = arith.constant 0 : index
    %6 = vector.load %arg6[%c0_11, %c0_12] : memref<1x128xf32, #tpu.memory_space<vmem>>, vector<1x128xf32>
    %c0_13 = arith.constant 0 : index
    %c0_14 = arith.constant 0 : index
    %7 = vector.load %arg8[%c0_13, %c0_14] : memref<1x64xf32, #tpu.memory_space<vmem>>, vector<1x64xf32>
    %8 = tpu.iota {dimensions = array<i32: 1>} : vector<128x16xi32>
    %9 = vector.extract_strided_slice %1 {offsets = [0, 0], sizes = [128, 64], strides = [1, 1]} : vector<128x128xf32> to vector<128x64xf32>
    %10 = vector.extract_strided_slice %0 {offsets = [0, 0], sizes = [128, 1], strides = [1, 1]} : vector<128x4xi32> to vector<128x1xi32>
    %11 = vector.broadcast %10 : vector<128x1xi32> to vector<128x16xi32>
    %12 = arith.cmpi eq, %11, %8 : vector<128x16xi32>
    %13 = arith.extui %12 : vector<128x16xi1> to vector<128x16xi32>
    %14 = arith.sitofp %13 : vector<128x16xi32> to vector<128x16xf32>
    %cst = arith.constant dense<0.000000e+00> : vector<128x128xf32>
    %15 = tpu.matmul %14, %2, %cst {dimension_numbers = #tpu.dot_dimension_numbers<[1], [0], [0], [1], [0, 0, 1, 1], [], []>} : vector<128x16xf32>, vector<16x128xf32>, vector<128x128xf32> -> vector<128x128xf32>
    %16 = vector.extract_strided_slice %0 {offsets = [0, 1], sizes = [128, 1], strides = [1, 1]} : vector<128x4xi32> to vector<128x1xi32>
    %17 = vector.broadcast %16 : vector<128x1xi32> to vector<128x16xi32>
    %18 = arith.cmpi eq, %17, %8 : vector<128x16xi32>
    %19 = arith.extui %18 : vector<128x16xi1> to vector<128x16xi32>
    %20 = arith.sitofp %19 : vector<128x16xi32> to vector<128x16xf32>
    %cst_15 = arith.constant dense<0.000000e+00> : vector<128x128xf32>
    %21 = tpu.matmul %20, %3, %cst_15 {dimension_numbers = #tpu.dot_dimension_numbers<[1], [0], [0], [1], [0, 0, 1, 1], [], []>} : vector<128x16xf32>, vector<16x128xf32>, vector<128x128xf32> -> vector<128x128xf32>
    %22 = arith.addf %15, %21 : vector<128x128xf32>
    %cst_16 = arith.constant dense<0.000000e+00> : vector<128x128xf32>
    %23 = tpu.matmul %9, %4, %cst_16 {dimension_numbers = #tpu.dot_dimension_numbers<[1], [0], [0], [1], [0, 0, 1, 1], [], []>} : vector<128x64xf32>, vector<64x128xf32>, vector<128x128xf32> -> vector<128x128xf32>
    %24 = arith.addf %22, %23 : vector<128x128xf32>
    %25 = vector.broadcast %6 : vector<1x128xf32> to vector<128x128xf32>
    %26 = arith.addf %24, %25 : vector<128x128xf32>
    %cst_17 = arith.constant 0.000000e+00 : f32
    %27 = vector.broadcast %cst_17 : f32 to vector<128x128xf32>
    %28 = arith.maximumf %26, %27 : vector<128x128xf32>
    %29 = math.absf %26 : vector<128x128xf32>
    %cst_18 = arith.constant 0.000000e+00 : f32
    %30 = vector.broadcast %cst_18 : f32 to vector<128x128xf32>
    %31 = arith.subf %30, %29 : vector<128x128xf32>
    %32 = math.exp %31 : vector<128x128xf32>
    %33 = math.log1p %32 : vector<128x128xf32>
    %34 = arith.addf %28, %33 : vector<128x128xf32>
    %cst_19 = arith.constant dense<0.000000e+00> : vector<128x64xf32>
    %35 = tpu.matmul %34, %5, %cst_19 {dimension_numbers = #tpu.dot_dimension_numbers<[1], [0], [0], [1], [0, 0, 1, 1], [], []>} : vector<128x128xf32>, vector<128x64xf32>, vector<128x64xf32> -> vector<128x64xf32>
    %36 = vector.broadcast %7 : vector<1x64xf32> to vector<128x64xf32>
    %37 = arith.addf %35, %36 : vector<128x64xf32>
    %38 = vector.extract_strided_slice %1 {offsets = [0, 64], sizes = [128, 64], strides = [1, 1]} : vector<128x128xf32> to vector<128x64xf32>
    %39 = vector.extract_strided_slice %0 {offsets = [0, 2], sizes = [128, 1], strides = [1, 1]} : vector<128x4xi32> to vector<128x1xi32>
    %40 = vector.broadcast %39 : vector<128x1xi32> to vector<128x16xi32>
    %41 = arith.cmpi eq, %40, %8 : vector<128x16xi32>
    %42 = arith.extui %41 : vector<128x16xi1> to vector<128x16xi32>
    %43 = arith.sitofp %42 : vector<128x16xi32> to vector<128x16xf32>
    %cst_20 = arith.constant dense<0.000000e+00> : vector<128x128xf32>
    %44 = tpu.matmul %43, %2, %cst_20 {dimension_numbers = #tpu.dot_dimension_numbers<[1], [0], [0], [1], [0, 0, 1, 1], [], []>} : vector<128x16xf32>, vector<16x128xf32>, vector<128x128xf32> -> vector<128x128xf32>
    %45 = vector.extract_strided_slice %0 {offsets = [0, 3], sizes = [128, 1], strides = [1, 1]} : vector<128x4xi32> to vector<128x1xi32>
    %46 = vector.broadcast %45 : vector<128x1xi32> to vector<128x16xi32>
    %47 = arith.cmpi eq, %46, %8 : vector<128x16xi32>
    %48 = arith.extui %47 : vector<128x16xi1> to vector<128x16xi32>
    %49 = arith.sitofp %48 : vector<128x16xi32> to vector<128x16xf32>
    %cst_21 = arith.constant dense<0.000000e+00> : vector<128x128xf32>
    %50 = tpu.matmul %49, %3, %cst_21 {dimension_numbers = #tpu.dot_dimension_numbers<[1], [0], [0], [1], [0, 0, 1, 1], [], []>} : vector<128x16xf32>, vector<16x128xf32>, vector<128x128xf32> -> vector<128x128xf32>
    %51 = arith.addf %44, %50 : vector<128x128xf32>
    %cst_22 = arith.constant dense<0.000000e+00> : vector<128x128xf32>
    %52 = tpu.matmul %38, %4, %cst_22 {dimension_numbers = #tpu.dot_dimension_numbers<[1], [0], [0], [1], [0, 0, 1, 1], [], []>} : vector<128x64xf32>, vector<64x128xf32>, vector<128x128xf32> -> vector<128x128xf32>
    %53 = arith.addf %51, %52 : vector<128x128xf32>
    %54 = vector.broadcast %6 : vector<1x128xf32> to vector<128x128xf32>
    %55 = arith.addf %53, %54 : vector<128x128xf32>
    %cst_23 = arith.constant 0.000000e+00 : f32
    %56 = vector.broadcast %cst_23 : f32 to vector<128x128xf32>
    %57 = arith.maximumf %55, %56 : vector<128x128xf32>
    %58 = math.absf %55 : vector<128x128xf32>
    %cst_24 = arith.constant 0.000000e+00 : f32
    %59 = vector.broadcast %cst_24 : f32 to vector<128x128xf32>
    %60 = arith.subf %59, %58 : vector<128x128xf32>
    %61 = math.exp %60 : vector<128x128xf32>
    %62 = math.log1p %61 : vector<128x128xf32>
    %63 = arith.addf %57, %62 : vector<128x128xf32>
    %cst_25 = arith.constant dense<0.000000e+00> : vector<128x64xf32>
    %64 = tpu.matmul %63, %5, %cst_25 {dimension_numbers = #tpu.dot_dimension_numbers<[1], [0], [0], [1], [0, 0, 1, 1], [], []>} : vector<128x128xf32>, vector<128x64xf32>, vector<128x64xf32> -> vector<128x64xf32>
    %65 = vector.broadcast %7 : vector<1x64xf32> to vector<128x64xf32>
    %66 = arith.addf %64, %65 : vector<128x64xf32>
    %67 = tpu.concatenate %37, %66 in 1 : vector<128x64xf32>, vector<128x64xf32> -> vector<128x128xf32>
    %c0_26 = arith.constant 0 : index
    %c0_27 = arith.constant 0 : index
    %68 = vector.load %arg9[%c0_26, %c0_27] : memref<128x128xf32, #tpu.memory_space<vmem>>, vector<128x128xf32>
    tpu.vector_store %arg9[%c0_26, %c0_27], %67 {strides = array<i32>} : memref<128x128xf32, #tpu.memory_space<vmem>>, vector<128x128xf32>,
    return
  }
  func.func @transform_0(%arg0: i32) -> (i32, i32) {
    %c0_i32 = arith.constant 0 : i32
    %c0_i32_0 = arith.constant 0 : i32
    return %arg0, %c0_i32 : i32, i32
  }
  func.func @transform_1(%arg0: i32) -> (i32, i32) {
    %c0_i32 = arith.constant 0 : i32
    %c0_i32_0 = arith.constant 0 : i32
    return %arg0, %c0_i32 : i32, i32
  }
  func.func @transform_2(%arg0: i32) -> (i32, i32) {
    %c0_i32 = arith.constant 0 : i32
    %c0_i32_0 = arith.constant 0 : i32
    %c0_i32_1 = arith.constant 0 : i32
    return %c0_i32, %c0_i32_0 : i32, i32
  }
  func.func @transform_3(%arg0: i32) -> (i32, i32) {
    %c0_i32 = arith.constant 0 : i32
    %c0_i32_0 = arith.constant 0 : i32
    %c0_i32_1 = arith.constant 0 : i32
    return %c0_i32, %c0_i32_0 : i32, i32
  }
  func.func @transform_4(%arg0: i32) -> (i32, i32) {
    %c0_i32 = arith.constant 0 : i32
    %c0_i32_0 = arith.constant 0 : i32
    %c0_i32_1 = arith.constant 0 : i32
    return %c0_i32, %c0_i32_0 : i32, i32
  }
  func.func @transform_5(%arg0: i32) -> (i32, i32) {
    %c0_i32 = arith.constant 0 : i32
    %c0_i32_0 = arith.constant 0 : i32
    %c0_i32_1 = arith.constant 0 : i32
    return %c0_i32, %c0_i32_0 : i32, i32
  }
  func.func @transform_6(%arg0: i32) -> (i32, i32) {
    %c0_i32 = arith.constant 0 : i32
    %c0_i32_0 = arith.constant 0 : i32
    %c0_i32_1 = arith.constant 0 : i32
    return %c0_i32, %c0_i32_0 : i32, i32
  }
  func.func @transform_7(%arg0: i32) -> (i32, i32) {
    %c0_i32 = arith.constant 0 : i32
    %c0_i32_0 = arith.constant 0 : i32
    %c0_i32_1 = arith.constant 0 : i32
    return %c0_i32, %c0_i32_0 : i32, i32
  }
  func.func @transform_8(%arg0: i32) -> (i32, i32) {
    %c0_i32 = arith.constant 0 : i32
    %c0_i32_0 = arith.constant 0 : i32
    return %arg0, %c0_i32 : i32, i32
  }
}

</mosaic_0001>

<bundles_post_ra>
// kernel: tpu_custom_call.1
= control target key start
LH: loop header
LB: loop body
LE: loop exit
PB: predicated region body
PF: predicated region fallthrough
CT: control target
= control target key end

     0   :  { %v3609_v2 = vmov 1   ;;  %s4937_s0 = inlined_call_operand.vmem [shape: s32[128,4], index: 0, kind: input, shape index: {}]   ;;  %s4938_s1 = inlined_call_operand.vmem [shape: f32[128,128], index: 1, kind: input, shape index: {}]   ;;  %s4939_s2 = inlined_call_operand.vmem [shape: f32[16,128], index: 2, kind: input, shape index: {}]   ;;  %s4940_s3 = inlined_call_operand.vmem [shape: f32[16,128], index: 3, kind: input, shape index: {}]   ;;  %s4941_s4 = inlined_call_operand.vmem [shape: f32[64,128], index: 4, kind: input, shape index: {}]   ;;  %s4942_s5 = inlined_call_operand.vmem [shape: f32[1,128], index: 5, kind: input, shape index: {}]   ;;  %s4943_s6 = inlined_call_operand.vmem [shape: f32[128,64], index: 6, kind: input, shape index: {}]   ;;  %s4944_s7 = inlined_call_operand.vmem [shape: f32[1,64], index: 7, kind: input, shape index: {}]   ;;  %s4945_s8 = inlined_call_operand.hbm [shape: f32[128,128], index: 8, kind: output, shape index: {}]  }
   0x1   :  { %v3666_v0 = vld [vmem:[%s4937_s0 + $0x10] sm:$0xff]  ;;  %v3671_v1 = vld [vmem:[%s4937_s0] sm:$0xff]  ;;  %3448 = vset.pattern.permute.xlu1 %v3609_v2  ;;  %3447 = vset.pattern.permute.xlu0 %v3609_v2  ;;  %v3678_v3 = vld [vmem:[%s4937_s0 + $0x18] sm:$0xff] }
   0x2   :  { %197 = vperm.xlu1 %3448, %v3666_v0   ;;  %191 = vperm.xlu0 %3447, %v3671_v1   ;;  %v3683_v4 = vld [vmem:[%s4937_s0 + $0x8] sm:$0xff]  ;;  %v64_v5 = vld [vmem:[%s4940_s3] sm:$0xff] }
   0x3   :  { %v65_v6 = vld [vmem:[%s4940_s3 + $0x8] sm:$0xff] }
   0x4   :  { %v3696_v7 = vld [vmem:[%s4937_s0 + $0x28] sm:$0xff]  ;;  %v3698_v8 = vpack.c.bf16 %v65_v6, %v64_v5 }
   0x6   :  { %200 = vperm.xlu1 %3448, %v3678_v3   ;;  %194 = vperm.xlu0 %3447, %v3683_v4  }
   0x7   :  { %13 = vsyncpa [#allocation3], 0  ;;  %v3703_v9 = vld [vmem:[%s4937_s0 + $0x20] sm:$0xff]  ;;  %v63_v11 = vld [vmem:[%s4939_s2 + $0x8] sm:$0xff]  ;;  %3263 = vmatprep.subr.bf16.mxu0 %v3698_v8  ;;  %v3610_v23 = vmov 0   ;;  %v3611_v24 = vmov 3   ;;  %v92_v25 = vlaneseq }
   0x8   :  { %v62_v10 = vld [vmem:[%s4939_s2] sm:$0xff]  ;;  %3265 = vmatpush3.bf16.msra.mxu0 %v3698_v8  ;;  %v3720_v13 = vld [vmem:[%s4937_s0 + $0x38] sm:$0xff]  ;;  %v3725_v14 = vld [vmem:[%s4937_s0 + $0x30] sm:$0xff]  ;;  %vm286_vm0 = vcmask 130048   ;;  %v3612_v29 = vmov 2   ;;  %v4946_v30 = vmov 0.0  }
   0x9   :  { %v3712_v12 = vpack.c.bf16 %v63_v11, %v62_v10  ;;  %v3733_v15 = vld [vmem:[%s4937_s0 + $0x48] sm:$0xff]  ;;  %v3738_v16 = vld [vmem:[%s4937_s0 + $0x40] sm:$0xff]  ;;  %v3745_v17 = vld [vmem:[%s4937_s0 + $0x58] sm:$0xff]  ;;  %v3808_v26 = vand.u32 127, %v92_v25  ;;  %s3614_s29 = smov 64  }
   0xa   :  { %206 = vperm.xlu1 %3448, %v3696_v7   ;;  %203 = vperm.xlu0 %3447, %v3703_v9   ;;  %v3750_v18 = vld [vmem:[%s4937_s0 + $0x50] sm:$0xff]  ;;  %v3757_v19 = vld [vmem:[%s4937_s0 + $0x68] sm:$0xff]  ;;  %v3762_v20 = vld [vmem:[%s4937_s0 + $0x60] sm:$0xff] }
   0xb   :  { %3267 = vmatprep.subr.bf16.mxu0 %v3712_v12  ;;  %v3769_v21 = vld [vmem:[%s4937_s0 + $0x78] sm:$0xff]  ;;  %v3774_v22 = vld [vmem:[%s4937_s0 + $0x70] sm:$0xff]  ;;  %v66_v32 = vld [vmem:[%s4941_s4] sm:$0xff] }
   0xc   :  { %v67_v33 = vld [vmem:[%s4941_s4 + $0x8] sm:$0xff]  ;;  %v68_v2 = vld [vmem:[%s4941_s4 + $0x10] sm:$0xff]  ;;  %v70_v10 = vld [vmem:[%s4941_s4 + $0x20] sm:$0xff] }
   0xd   :  { %v3825_v36 = vpack.c.bf16 %v67_v33, %v66_v32  ;;  %v71_v11 = vld [vmem:[%s4941_s4 + $0x28] sm:$0xff] }
   0xe   :  { %212 = vperm.xlu1 %3448, %v3720_v13   ;;  %209 = vperm.xlu0 %3447, %v3725_v14  }
  0x12   :  { %218 = vperm.xlu1 %3448, %v3733_v15   ;;  %215 = vperm.xlu0 %3447, %v3738_v16  }
  0x16   :  { %224 = vperm.xlu1 %3448, %v3745_v17   ;;  %221 = vperm.xlu0 %3447, %v3750_v18  }
  0x1a   :  { %230 = vperm.xlu1 %3448, %v3757_v19   ;;  %227 = vperm.xlu0 %3447, %v3762_v20  }
  0x1e   :  { %236 = vperm.xlu1 %3448, %v3769_v21   ;;  %233 = vperm.xlu0 %3447, %v3774_v22  }
  0x22   :  { %3450 = vset.pattern.permute.xlu1 %v3610_v23  ;;  %3449 = vset.pattern.permute.xlu0 %v3610_v23 }
  0x23   :  { %98 = vperm.xlu1 %3450, %v3683_v4   ;;  %95 = vperm.xlu0 %3449, %v3671_v1  }
  0x27   :  { %101 = vperm.xlu1 %3450, %v3666_v0   ;;  %104 = vperm.xlu0 %3449, %v3678_v3  }
  0x2b   :  { %107 = vperm.xlu1 %3450, %v3703_v9   ;;  %110 = vperm.xlu0 %3449, %v3696_v7  }
  0x2f   :  { %113 = vperm.xlu1 %3450, %v3725_v14   ;;  %116 = vperm.xlu0 %3449, %v3720_v13  }
  0x33   :  { %119 = vperm.xlu1 %3450, %v3738_v16   ;;  %122 = vperm.xlu0 %3449, %v3733_v15  }
  0x37   :  { %125 = vperm.xlu1 %3450, %v3750_v18   ;;  %128 = vperm.xlu0 %3449, %v3745_v17  }
  0x3b   :  { %131 = vperm.xlu1 %3450, %v3762_v20   ;;  %134 = vperm.xlu0 %3449, %v3757_v19  }
  0x3f   :  { %137 = vperm.xlu1 %3450, %v3774_v22   ;;  %140 = vperm.xlu0 %3449, %v3769_v21  }
  0x43   :  { %3451 = vset.pattern.permute.xlu1 %v3611_v24  ;;  %3452 = vset.pattern.permute.xlu0 %v3611_v24 }
  0x44   :  { %1393 = vperm.xlu1 %3451, %v3671_v1   ;;  %1396 = vperm.xlu0 %3452, %v3683_v4  }
  0x48   :  { %1399 = vperm.xlu1 %3451, %v3666_v0   ;;  %1405 = vperm.xlu0 %3452, %v3703_v9  }
  0x4c   :  { %1402 = vperm.xlu1 %3451, %v3678_v3   ;;  %1411 = vperm.xlu0 %3452, %v3725_v14  }
  0x50   :  { %1408 = vperm.xlu1 %3451, %v3696_v7   ;;  %1417 = vperm.xlu0 %3452, %v3738_v16  }
  0x54   :  { %1414 = vperm.xlu1 %3451, %v3720_v13   ;;  %1423 = vperm.xlu0 %3452, %v3750_v18  }
  0x58   :  { %1420 = vperm.xlu1 %3451, %v3733_v15   ;;  %1429 = vperm.xlu0 %3452, %v3762_v20  }
  0x5c   :  { %1426 = vperm.xlu1 %3451, %v3745_v17   ;;  %1435 = vperm.xlu0 %3452, %v3774_v22  }
  0x60   :  { %1432 = vperm.xlu1 %3451, %v3757_v19   ;;  %3453 = vset.pattern.permute.xlu0 %v3612_v29 }
  0x61   :  { %1297 = vperm.xlu0 %3453, %v3671_v1  }
  0x64   :  { %1438 = vperm.xlu1 %3451, %v3769_v21  }
  0x65   :  { %1306 = vperm.xlu0 %3453, %v3678_v3   ;;  %v69_v3 = vld [vmem:[%s4941_s4 + $0x18] sm:$0xff] }
  0x68   :  { %3454 = vset.pattern.permute.xlu1 %v3612_v29 }
  0x69   :  { %1300 = vperm.xlu1 %3454, %v3683_v4   ;;  %1312 = vperm.xlu0 %3453, %v3696_v7  }
  0x6d   :  { %1303 = vperm.xlu1 %3454, %v3666_v0   ;;  %1318 = vperm.xlu0 %3453, %v3720_v13  }
  0x71   :  { %1309 = vperm.xlu1 %3454, %v3703_v9   ;;  %1324 = vperm.xlu0 %3453, %v3733_v15   ;;  %v3899_v9 = vpack.c.bf16 %v69_v3, %v68_v2  ;;  %v77_v2 = vld [vmem:[%s4943_s6 + $0x18] sm:$0xff] }
  0x75   :  { %1315 = vperm.xlu1 %3454, %v3725_v14   ;;  %1330 = vperm.xlu0 %3453, %v3745_v17  }
  0x79   :  { %1321 = vperm.xlu1 %3454, %v3738_v16   ;;  %1336 = vperm.xlu0 %3453, %v3757_v19   ;;  %v3915_v16 = vpack.c.bf16 %v71_v11, %v70_v10  ;;  %v73_v19 = vld [vmem:[%s4941_s4 + $0x38] sm:$0xff] }
  0x7a   :  { %v81_v10 = vld [vmem:[%s4943_s6 + $0x38] sm:$0xff] }
  0x7d   :  { %1327 = vperm.xlu1 %3454, %v3750_v18   ;;  %1342 = vperm.xlu0 %3453, %v3769_v21   ;;  %v72_v18 = vld [vmem:[%s4941_s4 + $0x30] sm:$0xff] }
  0x7e   :  { %v3931_v23 = vpack.c.bf16 %v73_v19, %v72_v18  ;;  %v85_v18 = vld [vmem:[%s4943_s6 + $0x58] sm:$0xff] }
  0x81   :  { %v198_v27 = vpop.permute.xlu1 %197  ;;  %v192_v28 = vpop.permute.xlu0 %191  ;;  %1333 = vperm.xlu1 %3454, %v3762_v20   ;;  %3455 = vset.pattern.permute.xlu0 %v3611_v24 }
  0x82   :  { %vm238_vm1 = vcmp.eq.s32.totalorder %v192_v28, %v3808_v26  ;;  %vm240_vm2 = vcmp.eq.s32.totalorder %v198_v27, %v3808_v26 }
  0x83   :  { %v2628_v31 = vsel %vm238_vm1, 1.0, %v4946_v30  ;;  %v2630_v38 = vsel %vm240_vm2, 1.0, %v4946_v30 }
  0x84   :  { %2962 = vmatprep.mubr.msk.f32.mxu0 %vm286_vm0, %v2628_v31 }
  0x85   :  { %v201_v34 = vpop.permute.xlu1 %200  ;;  %v195_v35 = vpop.permute.xlu0 %194  ;;  %1339 = vperm.xlu1 %3454, %v3774_v22  }
  0x86   :  { %vm239_vm3 = vcmp.eq.s32.totalorder %v195_v35, %v3808_v26  ;;  %vm241_vm4 = vcmp.eq.s32.totalorder %v201_v34, %v3808_v26 }
  0x87   :  { %v2629_v37 = vsel %vm239_vm3, 1.0, %v4946_v30  ;;  %v2631_v41 = vsel %vm241_vm4, 1.0, %v4946_v30 }
  0x88   :  { %2963 = vmatmul.mubr.msk.f32.vlgmr.msra.gmra.mrb[0].mxu0 %vm286_vm0, %v2629_v37 }
  0x89   :  { %3269 = vmatpush3.bf16.msra.mxu0 %v3712_v12  ;;  %v207_v39 = vpop.permute.xlu1 %206  ;;  %2965 = vmatprep.mubr.msk.f32.mxu0 %vm286_vm0, %v2630_v38  ;;  %v204_v40 = vpop.permute.xlu0 %203 }
  0x8a   :  { %vm242_vm5 = vcmp.eq.s32.totalorder %v204_v40, %v3808_v26  ;;  %3271 = vmatprep.subr.bf16.mxu0 %v3825_v36  ;;  %vm243_vm6 = vcmp.eq.s32.totalorder %v207_v39, %v3808_v26 }
  0x8b   :  { %v2632_v42 = vsel %vm242_vm5, 1.0, %v4946_v30  ;;  %v2633_v45 = vsel %vm243_vm6, 1.0, %v4946_v30 }
  0x8c   :  { %2966 = vmatmul.mubr.msk.f32.gmra.mrb[2].mxu0 %vm286_vm0, %v2631_v41 }
  0x8d   :  { %v213_v43 = vpop.permute.xlu1 %212  ;;  %2968 = vmatprep.mubr.msk.f32.mxu0 %vm286_vm0, %v2632_v42  ;;  %v210_v44 = vpop.permute.xlu0 %209 }
  0x8e   :  { %vm244_vm7 = vcmp.eq.s32.totalorder %v210_v44, %v3808_v26  ;;  %vm245_vm8 = vcmp.eq.s32.totalorder %v213_v43, %v3808_v26 }
  0x8f   :  { %v2634_v46 = vsel %vm244_vm7, 1.0, %v4946_v30  ;;  %v2635_v49 = vsel %vm245_vm8, 1.0, %v4946_v30 }
  0x90   :  { %2969 = vmatmul.mubr.msk.f32.gmra.mrb[4].mxu0 %vm286_vm0, %v2633_v45  ;;  %v46_v45 = vld [vmem:[%s4938_s1] sm:$0xff] }
  0x91   :  { %v219_v47 = vpop.permute.xlu1 %218  ;;  %2971 = vmatprep.mubr.msk.f32.mxu0 %vm286_vm0, %v2634_v46  ;;  %v216_v48 = vpop.permute.xlu0 %215  ;;  %1874 = vrot.lane.b32.xlu1 %v46_v45, %s3614_s29 }
  0x92   :  { %vm246_vm9 = vcmp.eq.s32.totalorder %v216_v48, %v3808_v26  ;;  %vm247_vm10 = vcmp.eq.s32.totalorder %v219_v47, %v3808_v26  ;;  %v47_v47 = vld [vmem:[%s4938_s1 + $0x8] sm:$0xff]  ;;  %v3978_v48 = vld [vmem:[%s4938_s1 + $0x10] sm:$0xff] }
  0x93   :  { %v2636_v50 = vsel %vm246_vm9, 1.0, %v4946_v30  ;;  %v2637_v53 = vsel %vm247_vm10, 1.0, %v4946_v30  ;;  %1876 = vrot.lane.b32.xlu0 %v47_v47, %s3614_s29 }
  0x94   :  { %2972 = vmatmul.mubr.msk.f32.gmra.mrb[6].mxu0 %vm286_vm0, %v2635_v49  ;;  %v49_v49 = vld [vmem:[%s4938_s1 + $0x18] sm:$0xff] }
  0x95   :  { %v225_v51 = vpop.permute.xlu1 %224  ;;  %2974 = vmatprep.mubr.msk.f32.mxu0 %vm286_vm0, %v2636_v50  ;;  %v222_v52 = vpop.permute.xlu0 %221  ;;  %v3989_v50 = vld [vmem:[%s4938_s1 + $0x20] sm:$0xff]  ;;  %1878 = vrot.lane.b32.xlu1 %v3978_v48, %s3614_s29 }
  0x96   :  { %vm248_vm11 = vcmp.eq.s32.totalorder %v222_v52, %v3808_v26  ;;  %vm249_vm12 = vcmp.eq.s32.totalorder %v225_v51, %v3808_v26  ;;  %v3997_v51 = vld [vmem:[%s4938_s1 + $0x28] sm:$0xff]  ;;  %v4002_v52 = vld [vmem:[%s4938_s1 + $0x30] sm:$0xff] }
  0x97   :  { %v2638_v54 = vsel %vm248_vm11, 1.0, %v4946_v30  ;;  %v2639_v57 = vsel %vm249_vm12, 1.0, %v4946_v30  ;;  %1880 = vrot.lane.b32.xlu0 %v49_v49, %s3614_s29 }
  0x98   :  { %2975 = vmatmul.mubr.msk.f32.gmra.mrb[8].mxu0 %vm286_vm0, %v2637_v53  ;;  %v4011_v53 = vld [vmem:[%s4938_s1 + $0x38] sm:$0xff] }
  0x99   :  { %v231_v55 = vpop.permute.xlu1 %230  ;;  %2977 = vmatprep.mubr.msk.f32.mxu0 %vm286_vm0, %v2638_v54  ;;  %v228_v56 = vpop.permute.xlu0 %227  ;;  %v4016_v54 = vld [vmem:[%s4938_s1 + $0x40] sm:$0xff]  ;;  %1882 = vrot.lane.b32.xlu1 %v3989_v50, %s3614_s29 }
  0x9a   :  { %vm250_vm13 = vcmp.eq.s32.totalorder %v228_v56, %v3808_v26  ;;  %vm251_vm14 = vcmp.eq.s32.totalorder %v231_v55, %v3808_v26  ;;  %v4025_v55 = vld [vmem:[%s4938_s1 + $0x48] sm:$0xff]  ;;  %v4030_v56 = vld [vmem:[%s4938_s1 + $0x50] sm:$0xff] }
  0x9b   :  { %v2640_v58 = vsel %vm250_vm13, 1.0, %v4946_v30  ;;  %v2641_v61 = vsel %vm251_vm14, 1.0, %v4946_v30  ;;  %1884 = vrot.lane.b32.xlu0 %v3997_v51, %s3614_s29 }
  0x9c   :  { %2978 = vmatmul.mubr.msk.f32.gmra.mrb[10].mxu0 %vm286_vm0, %v2639_v57  ;;  %v4039_v57 = vld [vmem:[%s4938_s1 + $0x58] sm:$0xff] }
  0x9d   :  { %v237_v59 = vpop.permute.xlu1 %236  ;;  %2980 = vmatprep.mubr.msk.f32.mxu0 %vm286_vm0, %v2640_v58  ;;  %v234_v60 = vpop.permute.xlu0 %233  ;;  %v4044_v58 = vld [vmem:[%s4938_s1 + $0x60] sm:$0xff]  ;;  %1886 = vrot.lane.b32.xlu1 %v4002_v52, %s3614_s29 }
  0x9e   :  { %vm252_vm15 = vcmp.eq.s32.totalorder %v234_v60, %v3808_v26  ;;  %vm253_vm1 = vcmp.eq.s32.totalorder %v237_v59, %v3808_v26  ;;  %v4053_v59 = vld [vmem:[%s4938_s1 + $0x68] sm:$0xff]  ;;  %v4058_v60 = vld [vmem:[%s4938_s1 + $0x70] sm:$0xff] }
  0x9f   :  { %v2642_v62 = vsel %vm252_vm15, 1.0, %v4946_v30  ;;  %v2643_v1 = vsel %vm253_vm1, 1.0, %v4946_v30  ;;  %1888 = vrot.lane.b32.xlu0 %v4011_v53, %s3614_s29 }
  0xa0   :  { %2981 = vmatmul.mubr.msk.f32.gmra.mrb[12].mxu0 %vm286_vm0, %v2641_v61  ;;  %v4067_v61 = vld [vmem:[%s4938_s1 + $0x78] sm:$0xff] }
  0xa1   :  { %2983 = vmatprep.mubr.msk.f32.mxu0 %vm286_vm0, %v2642_v62  ;;  %v74_v62 = vld [vmem:[%s4943_s6] sm:$0xff]  ;;  %1890 = vrot.lane.b32.xlu1 %v4016_v54, %s3614_s29 }
  0xa2   :  { %v99_v63 = vpop.permute.xlu1 %98  ;;  %v96_v0 = vpop.permute.xlu0 %95 }
  0xa3   :  { %vm143_vm2 = vcmp.eq.s32.totalorder %v99_v63, %v3808_v26  ;;  %vm142_vm3 = vcmp.eq.s32.totalorder %v96_v0, %v3808_v26  ;;  %v75_v63 = vld [vmem:[%s4943_s6 + $0x8] sm:$0xff]  ;;  %1892 = vrot.lane.b32.xlu0 %v4025_v55, %s3614_s29 }
  0xa4   :  { %v2612_v4 = vsel %vm142_vm3, 1.0, %v4946_v30  ;;  %2984 = vmatmul.mubr.msk.f32.gmra.mrb[14].mxu0 %vm286_vm0, %v2643_v1  ;;  %v2613_v5 = vsel %vm143_vm2, 1.0, %v4946_v30  ;;  %vm673_vm3 = vcmask 523264   ;;  %v3286_v0 = vpack.c.bf16 %v75_v63, %v74_v62  ;;  %v76_v1 = vld [vmem:[%s4943_s6 + $0x10] sm:$0xff] }
  0xa5   :  { %2990 = vmatprep.mubr.msk.f32.mxu0 %vm286_vm0, %v2612_v4  ;;  %v3290_v3 = vpack.c.bf16 %v77_v2, %v76_v1  ;;  %v78_v4 = vld [vmem:[%s4943_s6 + $0x20] sm:$0xff]  ;;  %1894 = vrot.lane.b32.xlu1 %v4030_v56, %s3614_s29 }
  0xa6   :  { %v102_v6 = vpop.permute.xlu1 %101  ;;  %v105_v7 = vpop.permute.xlu0 %104  ;;  %3287 = vmatprep.subr.bf16.mxu1 %v3286_v0 }
  0xa7   :  { %vm144_vm4 = vcmp.eq.s32.totalorder %v102_v6, %v3808_v26  ;;  %vm145_vm5 = vcmp.eq.s32.totalorder %v105_v7, %v3808_v26  ;;  %3289 = vmatpush3.bf16.msra.mxu1 %v3286_v0  ;;  %v80_v7 = vld [vmem:[%s4943_s6 + $0x30] sm:$0xff]  ;;  %1896 = vrot.lane.b32.xlu0 %v4039_v57, %s3614_s29 }
  0xa8   :  { %v2614_v13 = vsel %vm144_vm4, 1.0, %v4946_v30  ;;  %2991 = vmatmul.mubr.msk.f32.vlgmr.msra.gmra.mrb[0].mxu0 %vm286_vm0, %v2613_v5  ;;  %v2615_v17 = vsel %vm145_vm5, 1.0, %v4946_v30  ;;  %3291 = vmatprep.subr.bf16.mxu1 %v3290_v3  ;;  %v79_v5 = vld [vmem:[%s4943_s6 + $0x28] sm:$0xff]  ;;  %v3298_v11 = vpack.c.bf16 %v81_v10, %v80_v7 }
  0xa9   :  { %3273 = vmatpush3.bf16.msra.mxu0 %v3825_v36  ;;  %2993 = vmatprep.mubr.msk.f32.mxu0 %vm286_vm0, %v2614_v13  ;;  %v3294_v6 = vpack.c.bf16 %v79_v5, %v78_v4  ;;  %v82_v13 = vld [vmem:[%s4943_s6 + $0x40] sm:$0xff] }
  0xaa   :  { %v108_v14 = vpop.permute.xlu1 %107  ;;  %v111_v15 = vpop.permute.xlu0 %110  ;;  %3275 = vmatprep.subr.bf16.mxu0 %v3899_v9  ;;  %1898 = vrot.lane.b32.xlu1 %v4044_v58, %s3614_s29 }
  0xab   :  { %vm146_vm6 = vcmp.eq.s32.totalorder %v108_v14, %v3808_v26  ;;  %vm147_vm7 = vcmp.eq.s32.totalorder %v111_v15, %v3808_v26  ;;  %3293 = vmatpush3.bf16.msra.mxu1 %v3290_v3  ;;  %v83_v14 = vld [vmem:[%s4943_s6 + $0x48] sm:$0xff]  ;;  %1900 = vrot.lane.b32.xlu0 %v4053_v59, %s3614_s29 }
  0xac   :  { %v2616_v20 = vsel %vm146_vm6, 1.0, %v4946_v30  ;;  %2994 = vmatmul.mubr.msk.f32.gmra.mrb[2].mxu0 %vm286_vm0, %v2615_v17  ;;  %v2617_v24 = vsel %vm147_vm7, 1.0, %v4946_v30  ;;  %3295 = vmatprep.subr.bf16.mxu1 %v3294_v6  ;;  %v3302_v15 = vpack.c.bf16 %v83_v14, %v82_v13  ;;  %v84_v17 = vld [vmem:[%s4943_s6 + $0x50] sm:$0xff] }
  0xad   :  { %2996 = vmatprep.mubr.msk.f32.mxu0 %vm286_vm0, %v2616_v20  ;;  %3277 = vmatpush3.bf16.msra.mxu0 %v3899_v9  ;;  %v3306_v19 = vpack.c.bf16 %v85_v18, %v84_v17  ;;  %v86_v20 = vld [vmem:[%s4943_s6 + $0x60] sm:$0xff] }
  0xae   :  { %v114_v21 = vpop.permute.xlu1 %113  ;;  %v117_v22 = vpop.permute.xlu0 %116  ;;  %3279 = vmatprep.subr.bf16.mxu0 %v3915_v16  ;;  %1902 = vrot.lane.b32.xlu1 %v4058_v60, %s3614_s29 }
  0xaf   :  { %vm148_vm8 = vcmp.eq.s32.totalorder %v114_v21, %v3808_v26  ;;  %vm149_vm9 = vcmp.eq.s32.totalorder %v117_v22, %v3808_v26  ;;  %3297 = vmatpush3.bf16.msra.mxu1 %v3294_v6  ;;  %v87_v21 = vld [vmem:[%s4943_s6 + $0x68] sm:$0xff]  ;;  %1904 = vrot.lane.b32.xlu0 %v4067_v61, %s3614_s29 }
  0xb0   :  { %v2618_v25 = vsel %vm148_vm8, 1.0, %v4946_v30  ;;  %2997 = vmatmul.mubr.msk.f32.gmra.mrb[4].mxu0 %vm286_vm0, %v2617_v24  ;;  %v2619_v29 = vsel %vm149_vm9, 1.0, %v4946_v30  ;;  %3299 = vmatprep.subr.bf16.mxu1 %v3298_v11  ;;  %v3310_v22 = vpack.c.bf16 %v87_v21, %v86_v20  ;;  %v88_v24 = vld [vmem:[%s4943_s6 + $0x70] sm:$0xff] }
  0xb1   :  { %2999 = vmatprep.mubr.msk.f32.mxu0 %vm286_vm0, %v2618_v25  ;;  %3281 = vmatpush3.bf16.msra.mxu0 %v3915_v16  ;;  %v89_v25 = vld [vmem:[%s4943_s6 + $0x78] sm:$0xff] }
  0xb2   :  { %v120_v27 = vpop.permute.xlu1 %119  ;;  %v123_v28 = vpop.permute.xlu0 %122  ;;  %3283 = vmatprep.subr.bf16.mxu0 %v3931_v23 }
  0xb3   :  { %vm150_vm10 = vcmp.eq.s32.totalorder %v120_v27, %v3808_v26  ;;  %vm151_vm11 = vcmp.eq.s32.totalorder %v123_v28, %v3808_v26  ;;  %3301 = vmatpush3.bf16.msra.mxu1 %v3298_v11  ;;  %v3314_v27 = vpack.c.bf16 %v89_v25, %v88_v24  ;;  %v4152_v28 = vld [vmem:[%s4942_s5] ss:$0 sm:$0xff] }
  0xb4   :  { %v2620_v31 = vsel %vm150_vm10, 1.0, %v4946_v30  ;;  %3000 = vmatmul.mubr.msk.f32.gmra.mrb[6].mxu0 %vm286_vm0, %v2619_v29  ;;  %v2621_v34 = vsel %vm151_vm11, 1.0, %v4946_v30  ;;  %3303 = vmatprep.subr.bf16.mxu1 %v3302_v15 }
  0xb5   :  { %3002 = vmatprep.mubr.msk.f32.mxu0 %vm286_vm0, %v2620_v31  ;;  %3285 = vmatpush3.bf16.msra.mxu0 %v3931_v23 }
  0xb6   :  { %v126_v32 = vpop.permute.xlu1 %125  ;;  %v129_v33 = vpop.permute.xlu0 %128  ;;  %3343 = vmatprep.subr.bf16.mxu0 %v3286_v0 }
  0xb7   :  { %vm152_vm12 = vcmp.eq.s32.totalorder %v126_v32, %v3808_v26  ;;  %vm153_vm13 = vcmp.eq.s32.totalorder %v129_v33, %v3808_v26  ;;  %3305 = vmatpush3.bf16.msra.mxu1 %v3302_v15 }
  0xb8   :  { %v2622_v35 = vsel %vm152_vm12, 1.0, %v4946_v30  ;;  %3003 = vmatmul.mubr.msk.f32.gmra.mrb[8].mxu0 %vm286_vm0, %v2621_v34  ;;  %v2623_v39 = vsel %vm153_vm13, 1.0, %v4946_v30  ;;  %3307 = vmatprep.subr.bf16.mxu1 %v3306_v19 }
  0xb9   :  { %3005 = vmatprep.mubr.msk.f32.mxu0 %vm286_vm0, %v2622_v35 }
  0xba   :  { %v132_v37 = vpop.permute.xlu1 %131  ;;  %v135_v38 = vpop.permute.xlu0 %134 }
  0xbb   :  { %vm154_vm14 = vcmp.eq.s32.totalorder %v132_v37, %v3808_v26  ;;  %vm155_vm15 = vcmp.eq.s32.totalorder %v135_v38, %v3808_v26  ;;  %3309 = vmatpush3.bf16.msra.mxu1 %v3306_v19 }
  0xbc   :  { %v2624_v40 = vsel %vm154_vm14, 1.0, %v4946_v30  ;;  %3006 = vmatmul.mubr.msk.f32.gmra.mrb[10].mxu0 %vm286_vm0, %v2623_v39  ;;  %v2625_v43 = vsel %vm155_vm15, 1.0, %v4946_v30  ;;  %3311 = vmatprep.subr.bf16.mxu1 %v3310_v22 }
  0xbd   :  { %3008 = vmatprep.mubr.msk.f32.mxu0 %vm286_vm0, %v2624_v40 }
  0xbe   :  { %v138_v41 = vpop.permute.xlu1 %137  ;;  %v141_v42 = vpop.permute.xlu0 %140 }
  0xbf   :  { %vm156_vm1 = vcmp.eq.s32.totalorder %v138_v41, %v3808_v26  ;;  %vm157_vm2 = vcmp.eq.s32.totalorder %v141_v42, %v3808_v26  ;;  %3313 = vmatpush3.bf16.msra.mxu1 %v3310_v22 }
  0xc0   :  { %v2626_v44 = vsel %vm156_vm1, 1.0, %v4946_v30  ;;  %3009 = vmatmul.mubr.msk.f32.gmra.mrb[12].mxu0 %vm286_vm0, %v2625_v43  ;;  %v2627_v46 = vsel %vm157_vm2, 1.0, %v4946_v30  ;;  %3315 = vmatprep.subr.bf16.mxu1 %v3314_v27 }
  0xc1   :  { %3011 = vmatprep.mubr.msk.f32.mxu0 %vm286_vm0, %v2626_v44 }
  0xc3   :  { %3317 = vmatpush3.bf16.msra.mxu1 %v3314_v27 }
  0xc4   :  { %3012 = vmatmul.mubr.msk.f32.gmra.mrb[14].mxu0 %vm286_vm0, %v2627_v46  ;;  %3319 = vmatprep.subr.bf16.mxu1 %v3698_v8 }
  0xc5   :  { %3030 = vmatprep.mubr.msk.f32.mxu0 %vm673_vm3, %v46_v45 }
  0xc8   :  { %3031 = vmatmul.mubr.msk.f32.vlgmr.msra.gmra.mrb[0].mxu0 %vm673_vm3, %v47_v47 }
  0xc9   :  { %3033 = vmatprep.mubr.msk.f32.mxu0 %vm673_vm3, %v3978_v48  ;;  %3345 = vmatpush3.bf16.msra.mxu0 %v3286_v0 }
  0xca   :  { %3347 = vmatprep.subr.bf16.mxu0 %v3290_v3 }
  0xcc   :  { %3034 = vmatmul.mubr.msk.f32.gmra.mrb[2].mxu0 %vm673_vm3, %v49_v49 }
  0xcd   :  { %3036 = vmatprep.mubr.msk.f32.mxu0 %vm673_vm3, %v3989_v50  ;;  %3349 = vmatpush3.bf16.msra.mxu0 %v3290_v3 }
  0xce   :  { %3351 = vmatprep.subr.bf16.mxu0 %v3294_v6 }
  0xd0   :  { %3037 = vmatmul.mubr.msk.f32.gmra.mrb[4].mxu0 %vm673_vm3, %v3997_v51 }
  0xd1   :  { %3039 = vmatprep.mubr.msk.f32.mxu0 %vm673_vm3, %v4002_v52  ;;  %3353 = vmatpush3.bf16.msra.mxu0 %v3294_v6 }
  0xd2   :  { %3355 = vmatprep.subr.bf16.mxu0 %v3298_v11 }
  0xd4   :  { %3040 = vmatmul.mubr.msk.f32.gmra.mrb[6].mxu0 %vm673_vm3, %v4011_v53 }
  0xd5   :  { %3042 = vmatprep.mubr.msk.f32.mxu0 %vm673_vm3, %v4016_v54  ;;  %3357 = vmatpush3.bf16.msra.mxu0 %v3298_v11 }
  0xd6   :  { %3359 = vmatprep.subr.bf16.mxu0 %v3302_v15 }
  0xd8   :  { %3043 = vmatmul.mubr.msk.f32.gmra.mrb[8].mxu0 %vm673_vm3, %v4025_v55 }
  0xd9   :  { %3045 = vmatprep.mubr.msk.f32.mxu0 %vm673_vm3, %v4030_v56  ;;  %3361 = vmatpush3.bf16.msra.mxu0 %v3302_v15 }
  0xda   :  { %3363 = vmatprep.subr.bf16.mxu0 %v3306_v19 }
  0xdc   :  { %3046 = vmatmul.mubr.msk.f32.gmra.mrb[10].mxu0 %vm673_vm3, %v4039_v57 }
  0xdd   :  { %3048 = vmatprep.mubr.msk.f32.mxu0 %vm673_vm3, %v4044_v58  ;;  %3365 = vmatpush3.bf16.msra.mxu0 %v3306_v19 }
  0xde   :  { %3367 = vmatprep.subr.bf16.mxu0 %v3310_v22 }
  0xe0   :  { %3049 = vmatmul.mubr.msk.f32.gmra.mrb[12].mxu0 %vm673_vm3, %v4053_v59 }
  0xe1   :  { %3051 = vmatprep.mubr.msk.f32.mxu0 %vm673_vm3, %v4058_v60  ;;  %3369 = vmatpush3.bf16.msra.mxu0 %v3310_v22 }
  0xe2   :  { %3371 = vmatprep.subr.bf16.mxu0 %v3314_v27 }
  0xe4   :  { %3052 = vmatmul.mubr.msk.f32.gmra.mrb[14].mxu0 %vm673_vm3, %v4067_v61 }
  0xe5   :  { %3373 = vmatpush3.bf16.msra.mxu0 %v3314_v27 }
 0x19b   :  { %v3032_v29 = vpop.f32.mrb[0].mxu0 }
 0x19c   :  { %v4155_v31 = vadd.f32 %v3032_v29, %v4152_v28  ;;  %v788_v32 = vpop.f32.mrb[1].mxu0 }
 0x19d   :  { %v4158_v33 = vadd.f32 %v4152_v28, %v788_v32 }
 0x19e   :  { %v922_v37 = vand.u32 2147483647, %v4155_v31 }
 0x19f   :  { %v921_v34 = vand.u32 2147483647, %v4158_v33  ;;  %v3035_v35 = vpop.f32.mrb[2].mxu0 }
 0x1a0   :  { %v798_v38 = vpop.f32.mrb[3].mxu0  ;;  %v4166_v42 = vadd.f32 %v3035_v35, %v4152_v28  ;;  %v938_v44 = vsub.f32 0.0, %v922_v37 }
 0x1a1   :  { %v937_v39 = vsub.f32 0.0, %v921_v34  ;;  %v4163_v40 = vadd.f32 %v4152_v28, %v798_v38 }
 0x1a2   :  { %v924_v49 = vand.u32 2147483647, %v4166_v42  ;;  %v955_v51 = vmul.f32 1.442695, %v938_v44 }
 0x1a3   :  { %v953_v41 = vmul.f32 1.442695, %v937_v39  ;;  %v3038_v43 = vpop.f32.mrb[4].mxu0  ;;  %v923_v45 = vand.u32 2147483647, %v4163_v40 }
 0x1a4   :  { %v4170_v46 = vadd.f32 %v3038_v43, %v4152_v28  ;;  %v808_v47 = vpop.f32.mrb[5].mxu0  ;;  %v940_v59 = vsub.f32 0.0, %v924_v49  ;;  %v906_v49 = vmax.f32 %v4155_v31, 0.0 }
 0x1a5   :  { %3456 = vpow2.f32 %v953_v41  ;;  %v4173_v48 = vadd.f32 %v4152_v28, %v808_v47  ;;  %v939_v52 = vsub.f32 0.0, %v923_v45 }
 0x1a6   :  { %v926_v53 = vand.u32 2147483647, %v4170_v46  ;;  %3458 = vpow2.f32 %v955_v51  ;;  %v959_v7 = vmul.f32 1.442695, %v940_v59 }
 0x1a7   :  { %v3041_v50 = vpop.f32.mrb[6].mxu0  ;;  %v925_v56 = vand.u32 2147483647, %v4173_v48  ;;  %v957_v62 = vmul.f32 1.442695, %v939_v52  ;;  %v905_v52 = vmax.f32 %v4158_v33, 0.0 }
 0x1a8   :  { %v4178_v54 = vadd.f32 %v3041_v50, %v4152_v28  ;;  %v818_v55 = vpop.f32.mrb[7].mxu0  ;;  %v942_v63 = vsub.f32 0.0, %v926_v53 }
 0x1a9   :  { %v4182_v57 = vadd.f32 %v4152_v28, %v818_v55  ;;  %v941_v2 = vsub.f32 0.0, %v925_v56  ;;  %3460 = vpow2.f32 %v957_v62 }
 0x1aa   :  { %v928_v58 = vand.u32 2147483647, %v4178_v54  ;;  %v963_v14 = vmul.f32 1.442695, %v942_v63 }
 0x1ab   :  { %v927_v60 = vand.u32 2147483647, %v4182_v57  ;;  %v3044_v61 = vpop.f32.mrb[8].mxu0  ;;  %v961_v19 = vmul.f32 1.442695, %v941_v2 }
 0x1ac   :  { %v4187_v0 = vadd.f32 %v3044_v61, %v4152_v28  ;;  %v828_v1 = vpop.f32.mrb[9].mxu0  ;;  %v944_v4 = vsub.f32 0.0, %v928_v58 }
 0x1ad   :  { %v4190_v3 = vadd.f32 %v4152_v28, %v828_v1  ;;  %v943_v10 = vsub.f32 0.0, %v927_v60 }
 0x1ae   :  { %v930_v5 = vand.u32 2147483647, %v4187_v0  ;;  %v967_v22 = vmul.f32 1.442695, %v944_v4  ;;  %v908_v4 = vmax.f32 %v4166_v42, 0.0 }
 0x1af   :  { %v4193_v6 = vpop.eup %3456  ;;  %v929_v11 = vand.u32 2147483647, %v4190_v3  ;;  %v3047_v13 = vpop.f32.mrb[10].mxu0  ;;  %v965_v27 = vmul.f32 1.442695, %v943_v10 }
 0x1b0   :  { %v4197_v15 = vadd.f32 %v3047_v13, %v4152_v28  ;;  %v838_v17 = vpop.f32.mrb[11].mxu0  ;;  %v985_v18 = vadd.f32 1.0, %v4193_v6  ;;  %v946_v20 = vsub.f32 0.0, %v930_v5  ;;  %v988_v38 = vmul.f32 -0.5, %v4193_v6  ;;  %v4212_v43 = vpop.eup %3458 }
 0x1b1   :  { %v4201_v21 = vadd.f32 %v4152_v28, %v838_v17  ;;  %v945_v24 = vsub.f32 0.0, %v929_v11  ;;  %v994_v62 = vadd.f32 1.0, %v4212_v43  ;;  %v991_v2 = vand.u32 2147483647, %v4193_v6 }
 0x1b2   :  { %v932_v25 = vand.u32 2147483647, %v4197_v15  ;;  %3462 = vlog2.f32 %v985_v18  ;;  %v971_v39 = vmul.f32 1.442695, %v946_v20  ;;  %v989_v59 = vadd.f32 1.0, %v988_v38 }
 0x1b3   :  { %3464 = vpow2.f32 %v959_v7  ;;  %v931_v29 = vand.u32 2147483647, %v4201_v21  ;;  %v3050_v32 = vpop.f32.mrb[12].mxu0  ;;  %v969_v44 = vmul.f32 1.442695, %v945_v24  ;;  %v4225_v63 = vpop.eup %3460  ;;  %v907_v5 = vmax.f32 %v4163_v40, 0.0 }
 0x1b4   :  { %3466 = vpow2.f32 %v963_v14  ;;  %v948_v34 = vsub.f32 0.0, %v932_v25  ;;  %v4206_v35 = vadd.f32 %v3050_v32, %v4152_v28  ;;  %v848_v37 = vpop.f32.mrb[13].mxu0  ;;  %v990_v14 = vmul.f32 %v4193_v6, %v989_v59 }
 0x1b5   :  { %3468 = vpow2.f32 %v961_v19  ;;  %v4210_v41 = vadd.f32 %v4152_v28, %v848_v37  ;;  %v947_v45 = vsub.f32 0.0, %v931_v29  ;;  %v4235_v19 = vpop.permute.xlu1 %1393  ;;  %v1003_v24 = vadd.f32 1.0, %v4225_v63 }
 0x1b6   :  { %3470 = vpow2.f32 %v967_v22  ;;  %v934_v47 = vand.u32 2147483647, %v4206_v35  ;;  %v975_v53 = vmul.f32 1.442695, %v948_v34  ;;  %v997_v22 = vmul.f32 -0.5, %v4212_v43 }
 0x1b7   :  { %3472 = vpow2.f32 %v965_v27  ;;  %v933_v50 = vand.u32 2147483647, %v4210_v41  ;;  %v3053_v51 = vpop.f32.mrb[14].mxu0  ;;  %v973_v1 = vmul.f32 1.442695, %v947_v45  ;;  %v910_v27 = vmax.f32 %v4170_v46, 0.0 }
 0x1b8   :  { %v950_v55 = vsub.f32 0.0, %v934_v47  ;;  %v4219_v56 = vadd.f32 %v3053_v51, %v4152_v28  ;;  %v858_v58 = vpop.f32.mrb[15].mxu0  ;;  %3474 = vpow2.f32 %v971_v39  ;;  %vm992_vm4 = vcmp.lt.f32.partialorder %v991_v2, 0.0004427343 }
 0x1b9   :  { %v949_v60 = vsub.f32 0.0, %v933_v50  ;;  %v4222_v61 = vadd.f32 %v4152_v28, %v858_v58  ;;  %3476 = vpow2.f32 %v969_v44  ;;  %v909_v6 = vmax.f32 %v4173_v48, 0.0 }
 0x1ba   :  { %v936_v33 = vand.u32 2147483647, %v4219_v56  ;;  %3478 = vlog2.f32 %v994_v62  ;;  %v979_v11 = vmul.f32 1.442695, %v950_v55  ;;  %v1006_v44 = vmul.f32 -0.5, %v4225_v63  ;;  %v4258_v62 = vpop.permute.xlu1 %1399 }
 0x1bb   :  { %v935_v7 = vand.u32 2147483647, %v4222_v61  ;;  %3480 = vpow2.f32 %v975_v53  ;;  %v977_v18 = vmul.f32 1.442695, %v949_v60  ;;  %v912_v50 = vmax.f32 %v4178_v54, 0.0 }
 0x1bc   :  { %v3463_v10 = vpop.eup %3462  ;;  %v952_v13 = vsub.f32 0.0, %v936_v33  ;;  %3482 = vpow2.f32 %v973_v1  ;;  %v998_v51 = vadd.f32 1.0, %v997_v22  ;;  %v1000_v53 = vand.u32 2147483647, %v4212_v43 }
 0x1bd   :  { %v4233_v17 = vpop.eup %3464  ;;  %v987_v20 = vmul.f32 0.6931472, %v3463_v10  ;;  %v951_v29 = vsub.f32 0.0, %v935_v7  ;;  %3484 = vlog2.f32 %v1003_v24  ;;  %v911_v55 = vmax.f32 %v4182_v57, 0.0 }
 0x1be   :  { %v4239_v25 = vpop.eup %3466  ;;  %v983_v34 = vmul.f32 1.442695, %v952_v13  ;;  %3486 = vpow2.f32 %v979_v11  ;;  %v1012_v45 = vadd.f32 1.0, %v4233_v17  ;;  %v1015_v1 = vmul.f32 -0.5, %v4233_v17 }
 0x1bf   :  { %v4242_v32 = vpop.eup %3468  ;;  %v993_v37 = vsel %vm992_vm4, %v990_v14, %v987_v20  ;;  %3488 = vpow2.f32 %v977_v18  ;;  %v981_v58 = vmul.f32 1.442695, %v951_v29  ;;  %v1030_v33 = vadd.f32 1.0, %v4239_v25 }
 0x1c0   :  { %v4245_v38 = vpop.eup %3470  ;;  %v1129_v39 = vadd.f32 %v993_v37, %v905_v52  ;;  %3490 = vlog2.f32 %v1012_v45  ;;  %v1021_v59 = vadd.f32 1.0, %v4242_v32  ;;  %v1007_v7 = vadd.f32 1.0, %v1006_v44 }
 0x1c1   :  { %v4249_v47 = vpop.eup %3472  ;;  %3492 = vpow2.f32 %v983_v34  ;;  %v1009_v10 = vand.u32 2147483647, %v4225_v63  ;;  %v1024_v11 = vmul.f32 -0.5, %v4242_v32  ;;  %v999_v14 = vmul.f32 %v4212_v43, %v998_v51 }
 0x1c2   :  { %3086 = vmatprep.mubr.f32.mxu1 %v1129_v39  ;;  %v4255_v52 = vpop.eup %3474  ;;  %3494 = vlog2.f32 %v1021_v59  ;;  %vm4267_vm5 = vcmp.lt.f32.partialorder %v1000_v53, 0.0004427343  ;;  %v1039_v20 = vadd.f32 1.0, %v4249_v47  ;;  %v1018_v29 = vand.u32 2147483647, %v4233_v17 }
 0x1c3   :  { %v4262_v2 = vpop.eup %3476  ;;  %3496 = vlog2.f32 %v1030_v33  ;;  %v1033_v34 = vmul.f32 -0.5, %v4239_v25  ;;  %v1016_v37 = vadd.f32 1.0, %v1015_v1  ;;  %v1027_v39 = vand.u32 2147483647, %v4242_v32  ;;  %v4287_v33 = vpop.permute.xlu1 %1402 }
 0x1c4   :  { %v3479_v13 = vpop.eup %3478  ;;  %3498 = vpow2.f32 %v981_v58  ;;  %v1048_v43 = vadd.f32 1.0, %v4245_v38  ;;  %v1008_v51 = vmul.f32 %v4225_v63, %v1007_v7  ;;  %vm4283_vm6 = vcmp.lt.f32.partialorder %v1009_v10, 0.0004427343  ;;  %v4295_v63 = vpop.permute.xlu0 %1396 }
 0x1c5   :  { %v4272_v22 = vpop.eup %3480  ;;  %v996_v24 = vmul.f32 0.6931472, %v3479_v13  ;;  %3500 = vlog2.f32 %v1039_v20  ;;  %v1025_v58 = vadd.f32 1.0, %v1024_v11  ;;  %v1036_v13 = vand.u32 2147483647, %v4239_v25 }
 0x1c6   :  { %v4278_v44 = vpop.eup %3482  ;;  %v1042_v20 = vmul.f32 -0.5, %v4249_v47  ;;  %3502 = vlog2.f32 %v1048_v43  ;;  %v1034_v7 = vadd.f32 1.0, %v1033_v34  ;;  %v1051_v10 = vmul.f32 -0.5, %v4245_v38 }
 0x1c7   :  { %v1002_v45 = vsel %vm4267_vm5, %v999_v14, %v996_v24  ;;  %v3485_v59 = vpop.eup %3484  ;;  %v1057_v11 = vadd.f32 1.0, %v4262_v2  ;;  %v1017_v31 = vmul.f32 %v4233_v17, %v1016_v37  ;;  %vm4302_vm7 = vcmp.lt.f32.partialorder %v1018_v29, 0.0004427343 }
 0x1c8   :  { %v1130_v1 = vadd.f32 %v1002_v45, %v906_v49  ;;  %v4293_v18 = vpop.eup %3486  ;;  %v1005_v14 = vmul.f32 0.6931472, %v3485_v59  ;;  %vm4306_vm8 = vcmp.lt.f32.partialorder %v1027_v39, 0.0004427343  ;;  %v1066_v45 = vadd.f32 1.0, %v4255_v52 }
 0x1c9   :  { %v4299_v24 = vpop.eup %3488  ;;  %v1045_v17 = vand.u32 2147483647, %v4249_v47  ;;  %3504 = vlog2.f32 %v1057_v11  ;;  %vm4320_vm9 = vcmp.lt.f32.partialorder %v1036_v13, 0.0004427343  ;;  %v1043_v60 = vadd.f32 1.0, %v1042_v20 }
 0x1ca   :  { %3087 = vmatmul.mubr.f32.vlgmr.msra.gmra.mrb[0].mxu1 %v1130_v1  ;;  %v3491_v34 = vpop.eup %3490  ;;  %v1011_v59 = vsel %vm4283_vm6, %v1008_v51, %v1005_v14  ;;  %v1026_v1 = vmul.f32 %v4242_v32, %v1025_v58  ;;  %v1035_v51 = vmul.f32 %v4239_v25, %v1034_v7  ;;  %v1052_v32 = vadd.f32 1.0, %v1051_v10  ;;  %v4327_v14 = vpop.permute.xlu1 %1408 }
 0x1cb   :  { %3321 = vmatpush3.bf16.msra.mxu1 %v3698_v8  ;;  %v4316_v29 = vpop.eup %3492  ;;  %v1131_v37 = vadd.f32 %v1011_v59, %v907_v5  ;;  %v1014_v39 = vmul.f32 0.6931472, %v3491_v34  ;;  %3506 = vlog2.f32 %v1066_v45  ;;  %v1075_v53 = vadd.f32 1.0, %v4278_v44  ;;  %v4337_v10 = vpop.permute.xlu0 %1405 }
 0x1cc   :  { %3323 = vmatprep.subr.bf16.mxu1 %v3712_v12  ;;  %v3495_v8 = vpop.eup %3494  ;;  %v1060_v13 = vmul.f32 -0.5, %v4262_v2  ;;  %v1069_v20 = vmul.f32 -0.5, %v4255_v52  ;;  %vm4339_vm10 = vcmp.lt.f32.partialorder %v1045_v17, 0.0004427343  ;;  %v1054_v49 = vand.u32 2147483647, %v4245_v38 }
 0x1cd   :  { %v3497_v58 = vpop.eup %3496  ;;  %3089 = vmatprep.mubr.f32.mxu1 %v1131_v37  ;;  %v1020_v40 = vsel %vm4302_vm7, %v1017_v31, %v1014_v39  ;;  %v1023_v5 = vmul.f32 0.6931472, %v3495_v8  ;;  %v1044_v59 = vmul.f32 %v4249_v47, %v1043_v60  ;;  %v1063_v37 = vand.u32 2147483647, %v4262_v2 }
 0x1ce   :  { %v4333_v11 = vpop.eup %3498  ;;  %v1132_v25 = vadd.f32 %v1020_v40, %v908_v4  ;;  %v1032_v7 = vmul.f32 0.6931472, %v3497_v58  ;;  %3508 = vlog2.f32 %v1075_v53  ;;  %v1084_v39 = vadd.f32 1.0, %v4272_v22  ;;  %v4359_v30 = vpop.permute.xlu1 %1414 }
 0x1cf   :  { %v3501_v31 = vpop.eup %3500  ;;  %v1029_v34 = vsel %vm4306_vm8, %v1026_v1, %v1023_v5  ;;  %v1053_v58 = vmul.f32 %v4245_v38, %v1052_v32  ;;  %v1061_v43 = vadd.f32 1.0, %v1060_v13  ;;  %v1070_v1 = vadd.f32 1.0, %v1069_v20  ;;  %v4374_v40 = vpop.permute.xlu0 %1411 }
 0x1d0   :  { %3090 = vmatmul.mubr.f32.gmra.mrb[2].mxu1 %v1132_v25  ;;  %v1133_v42 = vadd.f32 %v1029_v34, %v909_v6  ;;  %v1038_v4 = vsel %vm4320_vm9, %v1035_v51, %v1032_v7  ;;  %v1041_v17 = vmul.f32 0.6931472, %v3501_v31  ;;  %v3503_v8 = vpop.eup %3502  ;;  %v1078_v47 = vmul.f32 -0.5, %v4278_v44 }
 0x1d1   :  { %v1134_v60 = vadd.f32 %v1038_v4, %v910_v27  ;;  %v1050_v6 = vmul.f32 0.6931472, %v3503_v8  ;;  %3510 = vlog2.f32 %v1084_v39  ;;  %vm4363_vm11 = vcmp.lt.f32.partialorder %v1054_v49, 0.0004427343 }
 0x1d2   :  { %3092 = vmatprep.mubr.f32.mxu1 %v1133_v42  ;;  %v1047_v48 = vsel %vm4339_vm10, %v1044_v59, %v1041_v17  ;;  %vm4367_vm12 = vcmp.lt.f32.partialorder %v1063_v37, 0.0004427343  ;;  %v1093_v46 = vadd.f32 1.0, %v4299_v24  ;;  %v1072_v57 = vand.u32 2147483647, %v4255_v52  ;;  %v4391_v17 = vpop.permute.xlu1 %1420 }
 0x1d3   :  { %v1135_v51 = vadd.f32 %v1047_v48, %v911_v55  ;;  %v3505_v27 = vpop.eup %3504  ;;  %v1056_v53 = vsel %vm4363_vm11, %v1053_v58, %v1050_v6  ;;  %v1087_v55 = vmul.f32 -0.5, %v4272_v22  ;;  %v1102_v5 = vadd.f32 1.0, %v4293_v18 }
 0x1d4   :  { %3093 = vmatmul.mubr.f32.gmra.mrb[4].mxu1 %v1134_v60  ;;  %v1059_v13 = vmul.f32 0.6931472, %v3505_v27  ;;  %v1062_v20 = vmul.f32 %v4262_v2, %v1061_v43  ;;  %v1071_v25 = vmul.f32 %v4255_v52, %v1070_v1  ;;  %3512 = vlog2.f32 %v1093_v46  ;;  %v4394_v43 = vpop.permute.xlu0 %1417 }
 0x1d5   :  { %3095 = vmatprep.mubr.f32.mxu1 %v1135_v51  ;;  %v3507_v7 = vpop.eup %3506  ;;  %v1136_v45 = vadd.f32 %v1056_v53, %v912_v50  ;;  %v1079_v49 = vadd.f32 1.0, %v1078_v47  ;;  %v1081_v31 = vand.u32 2147483647, %v4278_v44  ;;  %3514 = vlog2.f32 %v1102_v5 }
 0x1d6   :  { %v1065_v34 = vsel %vm4367_vm12, %v1062_v20, %v1059_v13  ;;  %v1068_v59 = vmul.f32 0.6931472, %v3507_v7  ;;  %v1096_v37 = vmul.f32 -0.5, %v4299_v24  ;;  %v1111_v42 = vadd.f32 1.0, %v4333_v11  ;;  %v4406_v13 = vpop.permute.xlu1 %1426 }
 0x1d7   :  { %v914_v2 = vmax.f32 %v4187_v0, 0.0  ;;  %v4964_v52 = vmax.f32 %v4190_v3, 0.0  ;;  %vm1073_vm13 = vcmp.lt.f32.partialorder %v1072_v57, 0.0004427343  ;;  %v1088_v54 = vadd.f32 1.0, %v1087_v55 }
 0x1d8   :  { %3096 = vmatmul.mubr.f32.gmra.mrb[6].mxu1 %v1136_v45  ;;  %v3509_v50 = vpop.eup %3508  ;;  %v1074_v39 = vsel %vm1073_vm13, %v1071_v25, %v1068_v59  ;;  %v1105_v8 = vmul.f32 -0.5, %v4293_v18  ;;  %3516 = vlog2.f32 %v1111_v42  ;;  %v1080_v0 = vmul.f32 %v4278_v44, %v1079_v49  ;;  %v4409_v45 = vpop.permute.xlu0 %1423 }
 0x1d9   :  { %v1137_v4 = vadd.f32 %v1065_v34, %v4964_v52  ;;  %v1138_v58 = vadd.f32 %v1074_v39, %v914_v2  ;;  %v1077_v1 = vmul.f32 0.6931472, %v3509_v50  ;;  %v1090_v47 = vand.u32 2147483647, %v4272_v22 }
 0x1da   :  { %v915_v3 = vmax.f32 %v4201_v21, 0.0  ;;  %vm1082_vm14 = vcmp.lt.f32.partialorder %v1081_v31, 0.0004427343  ;;  %v1097_v60 = vadd.f32 1.0, %v1096_v37  ;;  %v1120_v48 = vadd.f32 1.0, %v4316_v29 }
 0x1db   :  { %3098 = vmatprep.mubr.f32.mxu1 %v1137_v4  ;;  %v3511_v6 = vpop.eup %3510  ;;  %v1083_v51 = vsel %vm1082_vm14, %v1080_v0, %v1077_v1  ;;  %v1089_v38 = vmul.f32 %v4272_v22, %v1088_v54  ;;  %v1099_v32 = vand.u32 2147483647, %v4299_v24  ;;  %v1114_v46 = vmul.f32 -0.5, %v4333_v11 }
 0x1dc   :  { %3099 = vmatmul.mubr.f32.gmra.mrb[8].mxu1 %v1138_v58  ;;  %v1139_v27 = vadd.f32 %v1083_v51, %v915_v3  ;;  %v1086_v53 = vmul.f32 0.6931472, %v3511_v6  ;;  %v1106_v44 = vadd.f32 1.0, %v1105_v8  ;;  %3518 = vlog2.f32 %v1120_v48  ;;  %v4417_v58 = vpop.permute.xlu1 %1432 }
 0x1dd   :  { %v916_v57 = vmax.f32 %v4197_v15, 0.0  ;;  %vm1091_vm15 = vcmp.lt.f32.partialorder %v1090_v47, 0.0004427343  ;;  %v1108_v21 = vand.u32 2147483647, %v4293_v18  ;;  %v917_v5 = vmax.f32 %v4210_v41, 0.0 }
 0x1de   :  { %v3513_v55 = vpop.eup %3512  ;;  %3101 = vmatprep.mubr.f32.mxu1 %v1139_v27  ;;  %v1092_v22 = vsel %vm1091_vm15, %v1089_v38, %v1086_v53  ;;  %v1098_v20 = vmul.f32 %v4299_v24, %v1097_v60  ;;  %v1115_v31 = vadd.f32 1.0, %v1114_v46  ;;  %v1123_v15 = vmul.f32 -0.5, %v4316_v29 }
 0x1df   :  { %v3515_v25 = vpop.eup %3514  ;;  %v1140_v7 = vadd.f32 %v1092_v22, %v916_v57  ;;  %v1095_v49 = vmul.f32 0.6931472, %v3513_v55  ;;  %vm1100_vm1 = vcmp.lt.f32.partialorder %v1099_v32, 0.0004427343  ;;  %v1107_v59 = vmul.f32 %v4293_v18, %v1106_v44 }
 0x1e0   :  { %v1104_v34 = vmul.f32 0.6931472, %v3515_v25  ;;  %v1117_v41 = vand.u32 2147483647, %v4333_v11  ;;  %v918_v37 = vmax.f32 %v4206_v35, 0.0  ;;  %v1116_v50 = vmul.f32 %v4333_v11, %v1115_v31  ;;  %v1430_v35 = vpop.permute.xlu0 %1429  ;;  %v4426_v11 = vpop.permute.xlu1 %1438 }
 0x1e1   :  { %3102 = vmatmul.mubr.f32.gmra.mrb[10].mxu1 %v1140_v7  ;;  %v1101_v42 = vsel %vm1100_vm1, %v1098_v20, %v1095_v49  ;;  %vm1109_vm2 = vcmp.lt.f32.partialorder %v1108_v21, 0.0004427343  ;;  %v1124_v39 = vadd.f32 1.0, %v1123_v15  ;;  %v919_v8 = vmax.f32 %v4222_v61, 0.0 }
 0x1e2   :  { %v3517_v24 = vpop.eup %3516  ;;  %v1141_v2 = vadd.f32 %v1101_v42, %v917_v5  ;;  %v1110_v52 = vsel %vm1109_vm2, %v1107_v59, %v1104_v34  ;;  %vm1118_vm4 = vcmp.lt.f32.partialorder %v1117_v41, 0.0004427343  ;;  %v1126_v18 = vand.u32 2147483647, %v4316_v29 }
 0x1e3   :  { %v1142_v4 = vadd.f32 %v1110_v52, %v918_v37  ;;  %v1113_v54 = vmul.f32 0.6931472, %v3517_v24  ;;  %v1125_v60 = vmul.f32 %v4316_v29, %v1124_v39  ;;  %v920_v48 = vmax.f32 %v4219_v56, 0.0 }
 0x1e4   :  { %3104 = vmatprep.mubr.f32.mxu1 %v1141_v2  ;;  %vm1127_vm5 = vcmp.lt.f32.partialorder %v1126_v18, 0.0004427343  ;;  %vm1440_vm6 = vcmp.eq.s32.totalorder %v4235_v19, %v3808_v26  ;;  %vm1441_vm7 = vcmp.eq.s32.totalorder %v4295_v63, %v3808_v26  ;;  %v1436_v51 = vpop.permute.xlu0 %1435  ;;  %v4965_v38 = vmov 0.0   ;;  %v1301_v29 = vpop.permute.xlu1 %1300 }
 0x1e5   :  { %3105 = vmatmul.mubr.f32.gmra.mrb[12].mxu1 %v1142_v4  ;;  %v1119_v1 = vsel %vm1118_vm4, %v1116_v50, %v1113_v54  ;;  %v2710_v32 = vsel %vm1440_vm6, 1.0, %v4965_v38  ;;  %vm1442_vm8 = vcmp.eq.s32.totalorder %v4258_v62, %v3808_v26  ;;  %v2711_v56 = vsel %vm1441_vm7, 1.0, %v4965_v38 }
 0x1e6   :  { %v3519_v0 = vpop.eup %3518  ;;  %v1143_v47 = vadd.f32 %v1119_v1, %v919_v8  ;;  %v2712_v19 = vsel %vm1442_vm8, 1.0, %v4965_v38  ;;  %vm1443_vm9 = vcmp.eq.s32.totalorder %v4287_v33, %v3808_v26  ;;  %vm1444_vm10 = vcmp.eq.s32.totalorder %v4337_v10, %v3808_v26 }
 0x1e7   :  { %v1122_v3 = vmul.f32 0.6931472, %v3519_v0  ;;  %v2713_v62 = vsel %vm1443_vm9, 1.0, %v4965_v38  ;;  %vm1445_vm11 = vcmp.eq.s32.totalorder %v4327_v14, %v3808_v26  ;;  %v2714_v46 = vsel %vm1444_vm10, 1.0, %v4965_v38 }
 0x1e8   :  { %3107 = vmatprep.mubr.f32.mxu1 %v1143_v47  ;;  %v1298_v63 = vpop.permute.xlu0 %1297  ;;  %v1304_v33 = vpop.permute.xlu1 %1303  ;;  %vm1446_vm12 = vcmp.eq.s32.totalorder %v4374_v40, %v3808_v26  ;;  %vm1447_vm13 = vcmp.eq.s32.totalorder %v4359_v30, %v3808_v26  ;;  %vm1448_vm14 = vcmp.eq.s32.totalorder %v4394_v43, %v3808_v26  ;;  %vm1449_vm15 = vcmp.eq.s32.totalorder %v4391_v17, %v3808_v26 }
 0x1e9   :  { %v1128_v61 = vsel %vm1127_vm5, %v1125_v60, %v1122_v3  ;;  %v2716_v27 = vsel %vm1446_vm12, 1.0, %v4965_v38  ;;  %v2717_v40 = vsel %vm1447_vm13, 1.0, %v4965_v38  ;;  %v2718_v53 = vsel %vm1448_vm14, 1.0, %v4965_v38 }
 0x1ea   :  { %v1144_v6 = vadd.f32 %v1128_v61, %v920_v48  ;;  %vm1450_vm1 = vcmp.eq.s32.totalorder %v4409_v45, %v3808_v26  ;;  %v2719_v43 = vsel %vm1449_vm15, 1.0, %v4965_v38  ;;  %vm1451_vm2 = vcmp.eq.s32.totalorder %v4406_v13, %v3808_v26 }
 0x1eb   :  { %v2720_v44 = vsel %vm1450_vm1, 1.0, %v4965_v38  ;;  %vm1452_vm4 = vcmp.eq.s32.totalorder %v1430_v35, %v3808_v26  ;;  %v2721_v17 = vsel %vm1451_vm2, 1.0, %v4965_v38  ;;  %vm1453_vm5 = vcmp.eq.s32.totalorder %v4417_v58, %v3808_v26 }
 0x1ec   :  { %3108 = vmatmul.mubr.f32.gmra.mrb[14].mxu1 %v1144_v6  ;;  %v1307_v10 = vpop.permute.xlu0 %1306  ;;  %v1310_v14 = vpop.permute.xlu1 %1309  ;;  %v2722_v55 = vsel %vm1452_vm4, 1.0, %v4965_v38  ;;  %vm1454_vm6 = vcmp.eq.s32.totalorder %v1436_v51, %v3808_v26  ;;  %v2723_v13 = vsel %vm1453_vm5, 1.0, %v4965_v38  ;;  %vm1344_vm7 = vcmp.eq.s32.totalorder %v1298_v63, %v3808_v26 }
 0x1ed   :  { %3114 = vmatprep.mubr.msk.f32.mxu1 %vm286_vm0, %v2710_v32  ;;  %vm1455_vm8 = vcmp.eq.s32.totalorder %v4426_v11, %v3808_v26  ;;  %v2724_v22 = vsel %vm1454_vm6, 1.0, %v4965_v38  ;;  %vm1345_vm9 = vcmp.eq.s32.totalorder %v1301_v29, %v3808_v26  ;;  %v2694_v25 = vsel %vm1344_vm7, 1.0, %v4965_v38 }
 0x1ee   :  { %v2725_v7 = vsel %vm1455_vm8, 1.0, %v4965_v38  ;;  %v2695_v49 = vsel %vm1345_vm9, 1.0, %v4965_v38  ;;  %vm1346_vm10 = vcmp.eq.s32.totalorder %v1304_v33, %v3808_v26  ;;  %vm1348_vm12 = vcmp.eq.s32.totalorder %v1310_v14, %v3808_v26 }
 0x1ef   :  { %v2696_v15 = vsel %vm1346_vm10, 1.0, %v4965_v38  ;;  %v2698_v41 = vsel %vm1348_vm12, 1.0, %v4965_v38 }
 0x1f0   :  { %3115 = vmatmul.mubr.msk.f32.vlgmr.msra.gmra.mrb[16].mxu1 %vm286_vm0, %v2711_v56  ;;  %v1313_v30 = vpop.permute.xlu0 %1312  ;;  %v1316_v57 = vpop.permute.xlu1 %1315 }
 0x1f1   :  { %3325 = vmatpush3.bf16.msra.mxu1 %v3712_v12  ;;  %3117 = vmatprep.mubr.msk.f32.mxu1 %vm286_vm0, %v2712_v19  ;;  %v2715_v12 = vsel %vm1445_vm11, 1.0, %v4965_v38  ;;  %vm1347_vm11 = vcmp.eq.s32.totalorder %v1307_v10, %v3808_v26  ;;  %vm1349_vm13 = vcmp.eq.s32.totalorder %v1313_v30, %v3808_v26  ;;  %vm1350_vm14 = vcmp.eq.s32.totalorder %v1316_v57, %v3808_v26 }
 0x1f2   :  { %3327 = vmatprep.subr.bf16.mxu1 %v3825_v36  ;;  %v2697_v59 = vsel %vm1347_vm11, 1.0, %v4965_v38  ;;  %v2700_v42 = vsel %vm1350_vm14, 1.0, %v4965_v38 }
 0x1f4   :  { %3118 = vmatmul.mubr.msk.f32.gmra.mrb[18].mxu1 %vm286_vm0, %v2713_v62  ;;  %v1319_v21 = vpop.permute.xlu0 %1318  ;;  %v1322_v5 = vpop.permute.xlu1 %1321 }
 0x1f5   :  { %3120 = vmatprep.mubr.msk.f32.mxu1 %vm286_vm0, %v2714_v46  ;;  %vm1351_vm15 = vcmp.eq.s32.totalorder %v1319_v21, %v3808_v26  ;;  %vm1352_vm1 = vcmp.eq.s32.totalorder %v1322_v5, %v3808_v26 }
 0x1f6   :  { %v2702_v52 = vsel %vm1352_vm1, 1.0, %v4965_v38 }
 0x1f8   :  { %3121 = vmatmul.mubr.msk.f32.gmra.mrb[20].mxu1 %vm286_vm0, %v2715_v12  ;;  %v1325_v20 = vpop.permute.xlu0 %1324  ;;  %v1328_v45 = vpop.permute.xlu1 %1327 }
 0x1f9   :  { %3123 = vmatprep.mubr.msk.f32.mxu1 %vm286_vm0, %v2716_v27  ;;  %vm1353_vm2 = vcmp.eq.s32.totalorder %v1325_v20, %v3808_v26  ;;  %vm1354_vm4 = vcmp.eq.s32.totalorder %v1328_v45, %v3808_v26 }
 0x1fa   :  { %v2704_v50 = vsel %vm1354_vm4, 1.0, %v4965_v38 }
 0x1fc   :  { %3124 = vmatmul.mubr.msk.f32.gmra.mrb[22].mxu1 %vm286_vm0, %v2717_v40  ;;  %v1331_v31 = vpop.permute.xlu0 %1330  ;;  %v1334_v34 = vpop.permute.xlu1 %1333 }
 0x1fd   :  { %3126 = vmatprep.mubr.msk.f32.mxu1 %vm286_vm0, %v2718_v53  ;;  %vm1355_vm5 = vcmp.eq.s32.totalorder %v1331_v31, %v3808_v26  ;;  %vm1356_vm6 = vcmp.eq.s32.totalorder %v1334_v34, %v3808_v26 }
 0x1fe   :  { %v2705_v8 = vsel %vm1355_vm5, 1.0, %v4965_v38  ;;  %v2706_v58 = vsel %vm1356_vm6, 1.0, %v4965_v38 }
 0x200   :  { %3127 = vmatmul.mubr.msk.f32.gmra.mrb[24].mxu1 %vm286_vm0, %v2719_v43  ;;  %v1337_v37 = vpop.permute.xlu0 %1336  ;;  %v1340_v24 = vpop.permute.xlu1 %1339 }
 0x201   :  { %3129 = vmatprep.mubr.msk.f32.mxu1 %vm286_vm0, %v2720_v44  ;;  %vm1357_vm7 = vcmp.eq.s32.totalorder %v1337_v37, %v3808_v26  ;;  %vm1358_vm8 = vcmp.eq.s32.totalorder %v1340_v24, %v3808_v26 }
 0x202   :  { %v2707_v18 = vsel %vm1357_vm7, 1.0, %v4965_v38  ;;  %v2708_v35 = vsel %vm1358_vm8, 1.0, %v4965_v38 }
 0x204   :  { %3130 = vmatmul.mubr.msk.f32.gmra.mrb[26].mxu1 %vm286_vm0, %v2721_v17  ;;  %v1343_v2 = vpop.permute.xlu0 %1342  ;;  %v1875_v4 = vpop.permute.xlu1 %1874 }
 0x205   :  { %3132 = vmatprep.mubr.msk.f32.mxu1 %vm286_vm0, %v2722_v55  ;;  %vm1359_vm9 = vcmp.eq.s32.totalorder %v1343_v2, %v3808_v26 }
 0x206   :  { %v2709_v0 = vsel %vm1359_vm9, 1.0, %v4965_v38 }
 0x208   :  { %3133 = vmatmul.mubr.msk.f32.gmra.mrb[28].mxu1 %vm286_vm0, %v2723_v13  ;;  %v1877_v54 = vpop.permute.xlu0 %1876  ;;  %v1879_v39 = vpop.permute.xlu1 %1878 }
 0x209   :  { %3135 = vmatprep.mubr.msk.f32.mxu1 %vm286_vm0, %v2724_v22 }
 0x20c   :  { %3136 = vmatmul.mubr.msk.f32.gmra.mrb[30].mxu1 %vm286_vm0, %v2725_v7  ;;  %v1883_v1 = vpop.permute.xlu1 %1882 }
 0x20d   :  { %3142 = vmatprep.mubr.msk.f32.mxu1 %vm286_vm0, %v2694_v25  ;;  %v4602_v25 = vld [vmem:[%s4942_s5] ss:$0 sm:$0xff] }
 0x210   :  { %3143 = vmatmul.mubr.msk.f32.vlgmr.msra.gmra.mrb[16].mxu1 %vm286_vm0, %v2695_v49  ;;  %v1887_v3 = vpop.permute.xlu1 %1886 }
 0x211   :  { %3329 = vmatpush3.bf16.msra.mxu1 %v3825_v36  ;;  %3145 = vmatprep.mubr.msk.f32.mxu1 %vm286_vm0, %v2696_v15  ;;  %v2699_v36 = vsel %vm1349_vm13, 1.0, %v4965_v38 }
 0x212   :  { %3331 = vmatprep.subr.bf16.mxu1 %v3899_v9 }
 0x214   :  { %3146 = vmatmul.mubr.msk.f32.gmra.mrb[18].mxu1 %vm286_vm0, %v2697_v59  ;;  %v1891_v26 = vpop.permute.xlu1 %1890 }
 0x215   :  { %3148 = vmatprep.mubr.msk.f32.mxu1 %vm286_vm0, %v2698_v41  ;;  %3333 = vmatpush3.bf16.msra.mxu1 %v3899_v9  ;;  %v2701_v9 = vsel %vm1351_vm15, 1.0, %v4965_v38 }
 0x216   :  { %3335 = vmatprep.subr.bf16.mxu1 %v3915_v16 }
 0x218   :  { %3149 = vmatmul.mubr.msk.f32.gmra.mrb[20].mxu1 %vm286_vm0, %v2699_v36  ;;  %v1895_v61 = vpop.permute.xlu1 %1894 }
 0x219   :  { %3151 = vmatprep.mubr.msk.f32.mxu1 %vm286_vm0, %v2700_v42  ;;  %3337 = vmatpush3.bf16.msra.mxu1 %v3915_v16  ;;  %v2703_v16 = vsel %vm1353_vm2, 1.0, %v4965_v38 }
 0x21a   :  { %3339 = vmatprep.subr.bf16.mxu1 %v3931_v23 }
 0x21c   :  { %3152 = vmatmul.mubr.msk.f32.gmra.mrb[22].mxu1 %vm286_vm0, %v2701_v9  ;;  %v1899_v6 = vpop.permute.xlu1 %1898 }
 0x21d   :  { %3154 = vmatprep.mubr.msk.f32.mxu1 %vm286_vm0, %v2702_v52  ;;  %3341 = vmatpush3.bf16.msra.mxu1 %v3931_v23  ;;  %v1881_v23 = vpop.permute.xlu0 %1880 }
 0x220   :  { %3155 = vmatmul.mubr.msk.f32.gmra.mrb[24].mxu1 %vm286_vm0, %v2703_v16  ;;  %v1903_v38 = vpop.permute.xlu1 %1902 }
 0x221   :  { %3157 = vmatprep.mubr.msk.f32.mxu1 %vm286_vm0, %v2704_v50  ;;  %v1885_v47 = vpop.permute.xlu0 %1884 }
 0x224   :  { %3158 = vmatmul.mubr.msk.f32.gmra.mrb[26].mxu1 %vm286_vm0, %v2705_v8 }
 0x225   :  { %3160 = vmatprep.mubr.msk.f32.mxu1 %vm286_vm0, %v2706_v58  ;;  %v1889_v60 = vpop.permute.xlu0 %1888 }
 0x228   :  { %3161 = vmatmul.mubr.msk.f32.gmra.mrb[28].mxu1 %vm286_vm0, %v2707_v18 }
 0x229   :  { %3163 = vmatprep.mubr.msk.f32.mxu1 %vm286_vm0, %v2708_v35  ;;  %v1893_v48 = vpop.permute.xlu0 %1892 }
 0x22c   :  { %3164 = vmatmul.mubr.msk.f32.gmra.mrb[30].mxu1 %vm286_vm0, %v2709_v0 }
 0x22d   :  { %3182 = vmatprep.mubr.msk.f32.mxu1 %vm673_vm3, %v1875_v4  ;;  %v1897_v11 = vpop.permute.xlu0 %1896 }
 0x230   :  { %3183 = vmatmul.mubr.msk.f32.vlgmr.msra.gmra.mrb[16].mxu1 %vm673_vm3, %v1877_v54 }
 0x231   :  { %3185 = vmatprep.mubr.msk.f32.mxu1 %vm673_vm3, %v1879_v39  ;;  %v1901_v51 = vpop.permute.xlu0 %1900 }
 0x234   :  { %3186 = vmatmul.mubr.msk.f32.gmra.mrb[18].mxu1 %vm673_vm3, %v1881_v23 }
 0x235   :  { %3188 = vmatprep.mubr.msk.f32.mxu1 %vm673_vm3, %v1883_v1  ;;  %v1905_v32 = vpop.permute.xlu0 %1904 }
 0x238   :  { %3189 = vmatmul.mubr.msk.f32.gmra.mrb[20].mxu1 %vm673_vm3, %v1885_v47 }
 0x239   :  { %3191 = vmatprep.mubr.msk.f32.mxu1 %vm673_vm3, %v1887_v3 }
 0x23c   :  { %3192 = vmatmul.mubr.msk.f32.gmra.mrb[22].mxu1 %vm673_vm3, %v1889_v60 }
 0x23d   :  { %3194 = vmatprep.mubr.msk.f32.mxu1 %vm673_vm3, %v1891_v26 }
 0x240   :  { %3195 = vmatmul.mubr.msk.f32.gmra.mrb[24].mxu1 %vm673_vm3, %v1893_v48 }
 0x241   :  { %3197 = vmatprep.mubr.msk.f32.mxu1 %vm673_vm3, %v1895_v61 }
 0x244   :  { %3198 = vmatmul.mubr.msk.f32.gmra.mrb[26].mxu1 %vm673_vm3, %v1897_v11 }
 0x245   :  { %3200 = vmatprep.mubr.msk.f32.mxu1 %vm673_vm3, %v1899_v6 }
 0x248   :  { %3201 = vmatmul.mubr.msk.f32.gmra.mrb[28].mxu1 %vm673_vm3, %v1901_v51 }
 0x249   :  { %3203 = vmatprep.mubr.msk.f32.mxu1 %vm673_vm3, %v1903_v38 }
 0x24c   :  { %3204 = vmatmul.mubr.msk.f32.gmra.mrb[30].mxu1 %vm673_vm3, %v1905_v32 }
 0x29d   :  { %v4559_v56 = vpop.f32.mrb[0].mxu1 }
 0x29e   :  { %v4561_v29 = vpop.f32.mrb[1].mxu1 }
 0x2a3   :  { %v4563_v19 = vpop.f32.mrb[2].mxu1 }
 0x2a4   :  { %v4565_v63 = vpop.f32.mrb[3].mxu1 }
 0x2a7   :  { %v4567_v62 = vpop.f32.mrb[4].mxu1 }
 0x2a8   :  { %v4569_v46 = vpop.f32.mrb[5].mxu1 }
 0x2ab   :  { %v4571_v33 = vpop.f32.mrb[6].mxu1 }
 0x2ac   :  { %v4573_v12 = vpop.f32.mrb[7].mxu1 }
 0x2af   :  { %v4575_v10 = vpop.f32.mrb[8].mxu1 }
 0x2b0   :  { %v4577_v27 = vpop.f32.mrb[9].mxu1 }
 0x2b4   :  { %v4579_v14 = vpop.f32.mrb[10].mxu1 }
 0x2b5   :  { %v4581_v40 = vpop.f32.mrb[11].mxu1 }
 0x2b8   :  { %v4583_v53 = vpop.f32.mrb[12].mxu1 }
 0x2b9   :  { %v4585_v30 = vpop.f32.mrb[13].mxu1 }
 0x2bf   :  { %v4587_v43 = vpop.f32.mrb[14].mxu1 }
 0x2c0   :  { %v4589_v44 = vpop.f32.mrb[15].mxu1 }
 0x303   :  { %v3184_v57 = vpop.f32.mrb[16].mxu1 }
 0x304   :  { %v4592_v17 = vadd.f32 %v3184_v57, %v4152_v28  ;;  %v2004_v21 = vpop.f32.mrb[17].mxu1 }
 0x305   :  { %v4595_v55 = vadd.f32 %v4152_v28, %v2004_v21 }
 0x306   :  { %v2132_v5 = vand.u32 2147483647, %v4592_v17  ;;  %v2116_v26 = vmax.f32 %v4592_v17, 0.0 }
 0x307   :  { %v2131_v13 = vand.u32 2147483647, %v4595_v55  ;;  %v3187_v22 = vpop.f32.mrb[18].mxu1  ;;  %v2115_v57 = vmax.f32 %v4595_v55, 0.0 }
 0x308   :  { %v2148_v20 = vsub.f32 0.0, %v2132_v5  ;;  %v4605_v7 = vadd.f32 %v4602_v25, %v3187_v22  ;;  %v2014_v45 = vpop.f32.mrb[19].mxu1 }
 0x309   :  { %v2147_v49 = vsub.f32 0.0, %v2131_v13  ;;  %v4608_v31 = vadd.f32 %v4602_v25, %v2014_v45 }
 0x30a   :  { %v2165_v28 = vmul.f32 1.442695, %v2148_v20  ;;  %v2134_v41 = vand.u32 2147483647, %v4605_v7 }
 0x30b   :  { %v2163_v15 = vmul.f32 1.442695, %v2147_v49  ;;  %v2133_v34 = vand.u32 2147483647, %v4608_v31  ;;  %v3190_v59 = vpop.f32.mrb[20].mxu1  ;;  %v2117_v22 = vmax.f32 %v4608_v31, 0.0 }
 0x30c   :  { %3520 = vpow2.f32 %v2165_v28  ;;  %v2024_v37 = vpop.f32.mrb[21].mxu1  ;;  %v4616_v24 = vadd.f32 %v4602_v25, %v3190_v59  ;;  %v2150_v2 = vsub.f32 0.0, %v2134_v41 }
 0x30d   :  { %v4613_v36 = vadd.f32 %v4602_v25, %v2024_v37  ;;  %3522 = vpow2.f32 %v2163_v15  ;;  %v2149_v42 = vsub.f32 0.0, %v2133_v34 }
 0x30e   :  { %v2136_v50 = vand.u32 2147483647, %v4616_v24  ;;  %v2169_v58 = vmul.f32 1.442695, %v2150_v2 }
 0x30f   :  { %v3193_v9 = vpop.f32.mrb[22].mxu1  ;;  %v2135_v52 = vand.u32 2147483647, %v4613_v36  ;;  %v2167_v54 = vmul.f32 1.442695, %v2149_v42 }
 0x310   :  { %v2034_v4 = vpop.f32.mrb[23].mxu1  ;;  %v4624_v39 = vadd.f32 %v4602_v25, %v3193_v9  ;;  %v2152_v3 = vsub.f32 0.0, %v2136_v50 }
 0x311   :  { %v4620_v16 = vadd.f32 %v4602_v25, %v2034_v4  ;;  %v2151_v23 = vsub.f32 0.0, %v2135_v52  ;;  %3524 = vpow2.f32 %v2167_v54 }
 0x312   :  { %v2138_v60 = vand.u32 2147483647, %v4624_v39  ;;  %3526 = vpow2.f32 %v2169_v58  ;;  %v2173_v20 = vmul.f32 1.442695, %v2152_v3 }
 0x313   :  { %v3196_v8 = vpop.f32.mrb[24].mxu1  ;;  %v2137_v18 = vand.u32 2147483647, %v4620_v16  ;;  %v2171_v6 = vmul.f32 1.442695, %v2151_v23 }
 0x314   :  { %v4628_v35 = vadd.f32 %v4602_v25, %v3196_v8  ;;  %v2044_v1 = vpop.f32.mrb[25].mxu1  ;;  %v2154_v45 = vsub.f32 0.0, %v2138_v60 }
 0x315   :  { %v4631_v0 = vadd.f32 %v4602_v25, %v2044_v1  ;;  %v2153_v51 = vsub.f32 0.0, %v2137_v18 }
 0x316   :  { %v4633_v47 = vpop.eup %3520  ;;  %v2140_v61 = vand.u32 2147483647, %v4628_v35  ;;  %v2177_v58 = vmul.f32 1.442695, %v2154_v45 }
 0x317   :  { %v2204_v48 = vadd.f32 1.0, %v4633_v47  ;;  %v4639_v11 = vpop.eup %3522  ;;  %v2139_v38 = vand.u32 2147483647, %v4631_v0  ;;  %v3199_v32 = vpop.f32.mrb[26].mxu1  ;;  %v2207_v28 = vmul.f32 -0.5, %v4633_v47 }
 0x318   :  { %v4645_v5 = vadd.f32 %v4602_v25, %v3199_v32  ;;  %v2054_v13 = vpop.f32.mrb[27].mxu1  ;;  %v2156_v15 = vsub.f32 0.0, %v2140_v61  ;;  %v2195_v41 = vadd.f32 1.0, %v4639_v11  ;;  %v2175_v37 = vmul.f32 1.442695, %v2153_v51 }
 0x319   :  { %3528 = vlog2.f32 %v2204_v48  ;;  %v4649_v49 = vadd.f32 %v4602_v25, %v2054_v13  ;;  %v2155_v42 = vsub.f32 0.0, %v2139_v38  ;;  %v2208_v48 = vadd.f32 1.0, %v2207_v28 }
 0x31a   :  { %v2142_v34 = vand.u32 2147483647, %v4645_v5  ;;  %3530 = vpow2.f32 %v2171_v6  ;;  %v2181_v1 = vmul.f32 1.442695, %v2156_v15  ;;  %v2198_v51 = vmul.f32 -0.5, %v4639_v11 }
 0x31b   :  { %v3202_v59 = vpop.f32.mrb[28].mxu1  ;;  %v2141_v9 = vand.u32 2147483647, %v4649_v49  ;;  %3532 = vlog2.f32 %v2195_v41  ;;  %v4665_v60 = vpop.eup %3524  ;;  %v2179_v61 = vmul.f32 1.442695, %v2155_v42 }
 0x31c   :  { %v2064_v2 = vpop.f32.mrb[29].mxu1  ;;  %v2158_v52 = vsub.f32 0.0, %v2142_v34  ;;  %v4656_v4 = vadd.f32 %v4602_v25, %v3202_v59  ;;  %3534 = vpow2.f32 %v2173_v20  ;;  %v4672_v34 = vpop.eup %3526 }
 0x31d   :  { %v4659_v54 = vadd.f32 %v4602_v25, %v2064_v2  ;;  %v2157_v23 = vsub.f32 0.0, %v2141_v9  ;;  %3536 = vpow2.f32 %v2175_v37  ;;  %v2210_v37 = vand.u32 2147483647, %v4633_v47 }
 0x31e   :  { %v2144_v3 = vand.u32 2147483647, %v4656_v4  ;;  %v2185_v38 = vmul.f32 1.442695, %v2158_v52  ;;  %3538 = vpow2.f32 %v2177_v58  ;;  %v2213_v9 = vadd.f32 1.0, %v4665_v60 }
 0x31f   :  { %v3205_v6 = vpop.f32.mrb[30].mxu1  ;;  %v2143_v13 = vand.u32 2147483647, %v4659_v54  ;;  %v2183_v59 = vmul.f32 1.442695, %v2157_v23  ;;  %3540 = vpow2.f32 %v2181_v1  ;;  %v2209_v52 = vmul.f32 %v4633_v47, %v2208_v48 }
 0x320   :  { %v2160_v32 = vsub.f32 0.0, %v2144_v3  ;;  %v4670_v45 = vadd.f32 %v4602_v25, %v3205_v6  ;;  %v2074_v20 = vpop.f32.mrb[31].mxu1  ;;  %3542 = vpow2.f32 %v2179_v61  ;;  %v2199_v3 = vadd.f32 1.0, %v2198_v51 }
 0x321   :  { %v4676_v28 = vadd.f32 %v4602_v25, %v2074_v20  ;;  %3544 = vpow2.f32 %v2185_v38  ;;  %v2159_v6 = vsub.f32 0.0, %v2143_v13  ;;  %v2201_v23 = vand.u32 2147483647, %v4639_v11 }
 0x322   :  { %v2146_v42 = vand.u32 2147483647, %v4670_v45  ;;  %v2189_v58 = vmul.f32 1.442695, %v2160_v32  ;;  %3546 = vpow2.f32 %v2183_v59  ;;  %v2216_v1 = vmul.f32 -0.5, %v4665_v60 }
 0x323   :  { %v3529_v41 = vpop.eup %3528  ;;  %v2145_v20 = vand.u32 2147483647, %v4676_v28  ;;  %v2222_v18 = vadd.f32 1.0, %v4672_v34  ;;  %vm4688_vm0 = vcmp.lt.f32.partialorder %v2210_v37, 0.0004427343  ;;  %3548 = vlog2.f32 %v2213_v9 }
 0x324   :  { %v2206_v2 = vmul.f32 0.6931472, %v3529_v41  ;;  %v4683_v25 = vpop.eup %3530  ;;  %v2162_v48 = vsub.f32 0.0, %v2146_v42  ;;  %v2200_v38 = vmul.f32 %v4639_v11, %v2199_v3  ;;  %v2187_v13 = vmul.f32 1.442695, %v2159_v6 }
 0x325   :  { %v3533_v15 = vpop.eup %3532  ;;  %3550 = vlog2.f32 %v2222_v18  ;;  %vm2202_vm10 = vcmp.lt.f32.partialorder %v2201_v23, 0.0004427343  ;;  %v2219_v59 = vand.u32 2147483647, %v4665_v60  ;;  %v2161_v50 = vsub.f32 0.0, %v2145_v20 }
 0x326   :  { %v2212_v61 = vsel %vm4688_vm0, %v2209_v52, %v2206_v2  ;;  %v2197_v51 = vmul.f32 0.6931472, %v3533_v15  ;;  %v4696_v32 = vpop.eup %3534  ;;  %3552 = vpow2.f32 %v2189_v58  ;;  %v2217_v42 = vadd.f32 1.0, %v2216_v1 }
 0x327   :  { %v4699_v37 = vpop.eup %3536  ;;  %v2231_v9 = vadd.f32 1.0, %v4683_v25  ;;  %v2340_v15 = vadd.f32 %v2212_v61, %v2116_v26  ;;  %v2193_v2 = vmul.f32 1.442695, %v2162_v48  ;;  %v2225_v18 = vmul.f32 -0.5, %v4672_v34 }
 0x328   :  { %v2203_v47 = vsel %vm2202_vm10, %v2200_v38, %v2197_v51  ;;  %v4707_v52 = vpop.eup %3538  ;;  %v2228_v3 = vand.u32 2147483647, %v4672_v34  ;;  %v2234_v58 = vmul.f32 -0.5, %v4683_v25  ;;  %v2240_v6 = vadd.f32 1.0, %v4696_v32 }
 0x329   :  { %v2339_v11 = vadd.f32 %v2203_v47, %v2115_v57  ;;  %3554 = vlog2.f32 %v2231_v9  ;;  %v4712_v23 = vpop.eup %3540  ;;  %v2237_v55 = vand.u32 2147483647, %v4683_v25  ;;  %v2249_v26 = vadd.f32 1.0, %v4699_v37 }
 0x32a   :  { %3556 = vpow2.f32 %v2187_v13  ;;  %v4717_v57 = vpop.eup %3542  ;;  %v2191_v20 = vmul.f32 1.442695, %v2161_v50  ;;  %v2218_v1 = vmul.f32 %v4665_v60, %v2217_v42  ;;  %vm4720_vm11 = vcmp.lt.f32.partialorder %v2219_v59, 0.0004427343 }
 0x32b   :  { %3238 = vmatprep.mubr.f32.mxu0 %v2339_v11  ;;  %3558 = vlog2.f32 %v2240_v6  ;;  %v4724_v47 = vpop.eup %3544  ;;  %v2226_v48 = vadd.f32 1.0, %v2225_v18  ;;  %v2243_v61 = vmul.f32 -0.5, %v4696_v32  ;;  %v2258_v51 = vadd.f32 1.0, %v4707_v52 }
 0x32c   :  { %3239 = vmatmul.mubr.f32.vlgmr.msra.gmra.mrb[16].mxu0 %v2340_v15  ;;  %3560 = vlog2.f32 %v2249_v26  ;;  %v4728_v38 = vpop.eup %3546  ;;  %vm4730_vm12 = vcmp.lt.f32.partialorder %v2228_v3, 0.0004427343  ;;  %v2235_v60 = vadd.f32 1.0, %v2234_v58  ;;  %v2252_v13 = vmul.f32 -0.5, %v4699_v37 }
 0x32d   :  { %3562 = vpow2.f32 %v2193_v2  ;;  %v3549_v59 = vpop.eup %3548  ;;  %vm4735_vm13 = vcmp.lt.f32.partialorder %v2237_v55, 0.0004427343  ;;  %v2246_v9 = vand.u32 2147483647, %v4696_v32  ;;  %v2267_v15 = vadd.f32 1.0, %v4717_v57 }
 0x32e   :  { %3564 = vlog2.f32 %v2258_v51  ;;  %v2215_v2 = vmul.f32 0.6931472, %v3549_v59  ;;  %v2255_v18 = vand.u32 2147483647, %v4699_v37  ;;  %v2261_v3 = vmul.f32 -0.5, %v4707_v52 }
 0x32f   :  { %v3551_v11 = vpop.eup %3550  ;;  %3566 = vpow2.f32 %v2191_v20  ;;  %v2227_v55 = vmul.f32 %v4672_v34, %v2226_v48  ;;  %v2244_v26 = vadd.f32 1.0, %v2243_v61  ;;  %v2253_v51 = vadd.f32 1.0, %v2252_v13 }
 0x330   :  { %v4743_v58 = vpop.eup %3552  ;;  %v2224_v6 = vmul.f32 0.6931472, %v3551_v11  ;;  %3568 = vlog2.f32 %v2267_v15  ;;  %v2221_v17 = vsel %vm4720_vm11, %v2218_v1, %v2215_v2  ;;  %v2270_v8 = vmul.f32 -0.5, %v4717_v57 }
 0x331   :  { %v2276_v20 = vadd.f32 1.0, %v4712_v23  ;;  %v2341_v59 = vadd.f32 %v2221_v17, %v2117_v22  ;;  %v2236_v11 = vmul.f32 %v4683_v25, %v2235_v60  ;;  %vm4755_vm14 = vcmp.lt.f32.partialorder %v2246_v9, 0.0004427343 }
 0x332   :  { %v2230_v21 = vsel %vm4730_vm12, %v2227_v55, %v2224_v6  ;;  %v4976_v1 = vmax.f32 %v4605_v7, 0.0  ;;  %vm4761_vm15 = vcmp.lt.f32.partialorder %v2255_v18, 0.0004427343  ;;  %v2262_v13 = vadd.f32 1.0, %v2261_v3 }
 0x333   :  { %v3555_v48 = vpop.eup %3554  ;;  %3570 = vlog2.f32 %v2276_v20  ;;  %3241 = vmatprep.mubr.f32.mxu0 %v2341_v59  ;;  %v2264_v25 = vand.u32 2147483647, %v4707_v52  ;;  %v2279_v17 = vmul.f32 -0.5, %v4712_v23  ;;  %v2285_v50 = vadd.f32 1.0, %v4728_v38 }
 0x334   :  { %v2342_v41 = vadd.f32 %v2230_v21, %v4976_v1  ;;  %v4765_v31 = vpop.eup %3556  ;;  %v2233_v22 = vmul.f32 0.6931472, %v3555_v48  ;;  %v2245_v7 = vmul.f32 %v4696_v32, %v2244_v26  ;;  %v2254_v21 = vmul.f32 %v4699_v37, %v2253_v51 }
 0x335   :  { %v3559_v60 = vpop.eup %3558  ;;  %v2271_v9 = vadd.f32 1.0, %v2270_v8  ;;  %v2294_v15 = vadd.f32 1.0, %v4724_v47  ;;  %v2273_v6 = vand.u32 2147483647, %v4717_v57  ;;  %3572 = vlog2.f32 %v2285_v50 }
 0x336   :  { %3242 = vmatmul.mubr.f32.gmra.mrb[18].mxu0 %v2342_v41  ;;  %v3561_v2 = vpop.eup %3560  ;;  %v2239_v18 = vsel %vm4735_vm13, %v2236_v11, %v2233_v22  ;;  %v2242_v3 = vmul.f32 0.6931472, %v3559_v60  ;;  %v4979_v20 = vmax.f32 %v4613_v36, 0.0  ;;  %v2263_v32 = vmul.f32 %v4707_v52, %v2262_v13 }
 0x337   :  { %v4776_v55 = vpop.eup %3562  ;;  %v2251_v48 = vmul.f32 0.6931472, %v3561_v2  ;;  %3574 = vlog2.f32 %v2294_v15  ;;  %v2280_v26 = vadd.f32 1.0, %v2279_v17  ;;  %v2288_v42 = vmul.f32 -0.5, %v4728_v38 }
 0x338   :  { %v2343_v59 = vadd.f32 %v2239_v18, %v4979_v20  ;;  %v3565_v8 = vpop.eup %3564  ;;  %v2248_v37 = vsel %vm4755_vm14, %v2245_v7, %v2242_v3  ;;  %v2297_v51 = vmul.f32 -0.5, %v4724_v47  ;;  %v4980_v1 = vmax.f32 %v4616_v24, 0.0 }
 0x339   :  { %v4785_v11 = vpop.eup %3566  ;;  %v2257_v41 = vsel %vm4761_vm15, %v2254_v21, %v2251_v48  ;;  %v2260_v52 = vmul.f32 0.6931472, %v3565_v8  ;;  %v2303_v13 = vadd.f32 1.0, %v4765_v31  ;;  %v4981_v34 = vmax.f32 %v4620_v16, 0.0 }
 0x33a   :  { %3244 = vmatprep.mubr.f32.mxu0 %v2343_v59  ;;  %v2344_v36 = vadd.f32 %v2248_v37, %v4980_v1  ;;  %v3569_v22 = vpop.eup %3568  ;;  %vm2265_vm1 = vcmp.lt.f32.partialorder %v2264_v25, 0.0004427343  ;;  %v2272_v50 = vmul.f32 %v4717_v57, %v2271_v9  ;;  %vm4795_vm2 = vcmp.lt.f32.partialorder %v2273_v6, 0.0004427343 }
 0x33b   :  { %v2345_v17 = vadd.f32 %v2257_v41, %v4981_v34  ;;  %v2266_v24 = vsel %vm2265_vm1, %v2263_v32, %v2260_v52  ;;  %v2269_v7 = vmul.f32 0.6931472, %v3569_v22  ;;  %v2282_v61 = vand.u32 2147483647, %v4712_v23 }
 0x33c   :  { %3245 = vmatmul.mubr.f32.gmra.mrb[20].mxu0 %v2344_v36  ;;  %3576 = vlog2.f32 %v2303_v13  ;;  %v2281_v21 = vmul.f32 %v4712_v23, %v2280_v26  ;;  %v2289_v15 = vadd.f32 1.0, %v2288_v42  ;;  %v2291_v16 = vand.u32 2147483647, %v4728_v38 }
 0x33d   :  { %3247 = vmatprep.mubr.f32.mxu0 %v2345_v17  ;;  %v2312_v25 = vadd.f32 1.0, %v4743_v58  ;;  %v3571_v2 = vpop.eup %3570  ;;  %v4984_v57 = vmax.f32 %v4624_v39, 0.0  ;;  %v2275_v18 = vsel %vm4795_vm2, %v2272_v50, %v2269_v7  ;;  %v2298_v3 = vadd.f32 1.0, %v2297_v51 }
 0x33e   :  { %v2321_v6 = vadd.f32 1.0, %v4785_v11  ;;  %v4985_v20 = vmax.f32 %v4631_v0, 0.0  ;;  %v2278_v48 = vmul.f32 0.6931472, %v3571_v2  ;;  %v2306_v23 = vmul.f32 -0.5, %v4765_v31 }
 0x33f   :  { %v2346_v9 = vadd.f32 %v2266_v24, %v4984_v57  ;;  %3578 = vlog2.f32 %v2312_v25  ;;  %v2125_v32 = vmax.f32 %v4649_v49, 0.0  ;;  %vm2283_vm4 = vcmp.lt.f32.partialorder %v2282_v61, 0.0004427343  ;;  %v3573_v8 = vpop.eup %3572 }
 0x340   :  { %v2347_v59 = vadd.f32 %v2275_v18, %v4985_v20  ;;  %v2300_v39 = vand.u32 2147483647, %v4724_v47  ;;  %3580 = vlog2.f32 %v2321_v6  ;;  %v2284_v37 = vsel %vm2283_vm4, %v2281_v21, %v2278_v48 }
 0x341   :  { %3248 = vmatmul.mubr.f32.gmra.mrb[22].mxu0 %v2346_v9  ;;  %v2290_v26 = vmul.f32 %v4728_v38, %v2289_v15  ;;  %vm4814_vm5 = vcmp.lt.f32.partialorder %v2291_v16, 0.0004427343  ;;  %v2330_v0 = vadd.f32 1.0, %v4776_v55  ;;  %v3575_v51 = vpop.eup %3574  ;;  %v4988_v1 = vmax.f32 %v4628_v35, 0.0 }
 0x342   :  { %3250 = vmatprep.mubr.f32.mxu0 %v2347_v59  ;;  %v2287_v36 = vmul.f32 0.6931472, %v3573_v8  ;;  %v2299_v41 = vmul.f32 %v4724_v47, %v2298_v3  ;;  %v2315_v52 = vmul.f32 -0.5, %v4743_v58  ;;  %v2296_v13 = vmul.f32 0.6931472, %v3575_v51 }
 0x343   :  { %v2348_v49 = vadd.f32 %v2284_v37, %v4988_v1  ;;  %v2307_v22 = vadd.f32 1.0, %v2306_v23  ;;  %v2324_v34 = vmul.f32 -0.5, %v4785_v11  ;;  %3582 = vlog2.f32 %v2330_v0 }
 0x344   :  { %v2126_v38 = vmax.f32 %v4645_v5, 0.0  ;;  %v2293_v17 = vsel %vm4814_vm5, %v2290_v26, %v2287_v36  ;;  %vm2301_vm6 = vcmp.lt.f32.partialorder %v2300_v39, 0.0004427343  ;;  %v2309_v35 = vand.u32 2147483647, %v4765_v31 }
 0x345   :  { %3251 = vmatmul.mubr.f32.gmra.mrb[24].mxu0 %v2348_v49  ;;  %v2349_v50 = vadd.f32 %v2293_v17, %v2125_v32  ;;  %v2302_v60 = vsel %vm2301_vm6, %v2299_v41, %v2296_v13  ;;  %v2316_v7 = vadd.f32 1.0, %v2315_v52  ;;  %v2333_v61 = vmul.f32 -0.5, %v4776_v55 }
 0x346   :  { %v3577_v24 = vpop.eup %3576  ;;  %v2350_v47 = vadd.f32 %v2302_v60, %v2126_v38  ;;  %v2308_v15 = vmul.f32 %v4765_v31, %v2307_v22  ;;  %v2318_v5 = vand.u32 2147483647, %v4743_v58  ;;  %v2325_v16 = vadd.f32 1.0, %v2324_v34 }
 0x347   :  { %3253 = vmatprep.mubr.f32.mxu0 %v2349_v50  ;;  %v2305_v21 = vmul.f32 0.6931472, %v3577_v24  ;;  %v2127_v25 = vmax.f32 %v4659_v54, 0.0  ;;  %vm2310_vm7 = vcmp.lt.f32.partialorder %v2309_v35, 0.0004427343  ;;  %v2128_v9 = vmax.f32 %v4656_v4, 0.0 }
 0x348   :  { %v2327_v2 = vand.u32 2147483647, %v4785_v11  ;;  %v2317_v59 = vmul.f32 %v4743_v58, %v2316_v7  ;;  %v2334_v48 = vadd.f32 1.0, %v2333_v61  ;;  %vm2319_vm8 = vcmp.lt.f32.partialorder %v2318_v5, 0.0004427343 }
 0x349   :  { %3254 = vmatmul.mubr.f32.gmra.mrb[26].mxu0 %v2350_v47  ;;  %v3579_v57 = vpop.eup %3578  ;;  %v2311_v18 = vsel %vm2310_vm7, %v2308_v15, %v2305_v21  ;;  %v2326_v23 = vmul.f32 %v4785_v11, %v2325_v16  ;;  %v2336_v54 = vand.u32 2147483647, %v4776_v55  ;;  %v2129_v32 = vmax.f32 %v4676_v28, 0.0  ;;  %v4843_v28 = vld [vmem:[%s4944_s7] ss:$0 sm:$0xff]  ;;  %s3615_s7 = smov [#allocation2]  }
 0x34a   :  { %v3581_v3 = vpop.eup %3580  ;;  %v2351_v6 = vadd.f32 %v2311_v18, %v2127_v25  ;;  %v2314_v20 = vmul.f32 0.6931472, %v3579_v57  ;;  %vm2328_vm9 = vcmp.lt.f32.partialorder %v2327_v2, 0.0004427343  ;;  %v2335_v0 = vmul.f32 %v4776_v55, %v2334_v48  ;;  %s2601_s24 = sshll.u32 %s3615_s7, 4  ;;  %s2602_s24 = int_to_ptr.vmem [resolvable:$true] %s2601_s24 }
 0x34b   :  { %v2323_v31 = vmul.f32 0.6931472, %v3581_v3  ;;  %v2130_v58 = vmax.f32 %v4670_v45, 0.0  ;;  %vm2337_vm0 = vcmp.lt.f32.partialorder %v2336_v54, 0.0004427343  ;;  %v1223_v48 = vadd.f32 %v4559_v56, %v4843_v28  ;;  %s3585_s25 = scalar_lea.vmem %s2602_s24, 2048  ;;  %p3590_p1 = scmp.lt.s32.totalorder %s2602_s24, %s2602_s24 }
 0x34c   :  { %3256 = vmatprep.mubr.f32.mxu0 %v2351_v6  ;;  %v2320_v39 = vsel %vm2319_vm8, %v2317_v59, %v2314_v20  ;;  %p3586_p0 = scmp.ne.s32.totalorder %s2602_s24, %s3585_s25  ;;  %p3591_p2 = scmp.lt.s32.totalorder %s3585_s25, %s3585_s25 }
 0x34d   :  { %v3583_v8 = vpop.eup %3582  ;;  %v2352_v4 = vadd.f32 %v2320_v39, %v2128_v9  ;;  %v2329_v37 = vsel %vm2328_vm9, %v2326_v23, %v2323_v31  ;;  %v1218_v31 = vadd.f32 %v4843_v28, %v4561_v29 }
 0x34e   :  { %v2353_v26 = vadd.f32 %v2329_v37, %v2129_v32  ;;  %v2332_v42 = vmul.f32 0.6931472, %v3583_v8  ;;  %v1233_v8 = vadd.f32 %v4563_v19, %v4843_v28  ;;  %p3592_p3 = por %p3591_p2, %p3590_p1 }
 0x34f   :  { %3257 = vmatmul.mubr.f32.gmra.mrb[28].mxu0 %v2352_v4  ;;  %v1228_v4 = vadd.f32 %v4843_v28, %v4565_v63 }
 0x350   :  { %3259 = vmatprep.mubr.f32.mxu0 %v2353_v26  ;;  %v2338_v11 = vsel %vm2337_vm0, %v2335_v0, %v2332_v42  ;;  %v1243_v42 = vadd.f32 %v4567_v62, %v4843_v28  ;;  %v1238_v0 = vadd.f32 %v4843_v28, %v4569_v46  ;;  %p3593_p4 = pnand %p3592_p3, %p3586_p0 }
 0x351   :  { %v2354_v51 = vadd.f32 %v2338_v11, %v2130_v58 }
 0x353   :  { %3260 = vmatmul.mubr.f32.gmra.mrb[30].mxu0 %v2354_v51  ;;  %v1253_v51 = vadd.f32 %v4571_v33, %v4843_v28 }
 0x3ff   :  { %v3240_v1 = vpop.f32.mrb[16].mxu0 }
 0x400   :  { %v2427_v49 = vadd.f32 %v3240_v1, %v4843_v28  ;;  %v2421_v36 = vpop.f32.mrb[17].mxu0  ;;  %v1248_v1 = vadd.f32 %v4843_v28, %v4573_v12 }
 0x401   :  { %v2422_v41 = vadd.f32 %v4843_v28, %v2421_v36 }
 0x402   :  { %2518 = vrot.lane.b32.xlu0 %v2427_v49, %s3614_s29 }
 0x403   :  { %2516 = vrot.lane.b32.xlu1 %v2422_v41, %s3614_s29  ;;  %v1263_v41 = vadd.f32 %v4575_v10, %v4843_v28 }
 0x409   :  { %v3243_v45 = vpop.f32.mrb[18].mxu0 }
 0x40a   :  { %v2437_v55 = vadd.f32 %v3243_v45, %v4843_v28  ;;  %v2431_v52 = vpop.f32.mrb[19].mxu0  ;;  %v1258_v45 = vadd.f32 %v4843_v28, %v4577_v27 }
 0x40b   :  { %v2432_v13 = vadd.f32 %v4843_v28, %v2431_v52 }
 0x40c   :  { %2522 = vrot.lane.b32.xlu0 %v2437_v55, %s3614_s29 }
 0x40d   :  { %2520 = vrot.lane.b32.xlu1 %v2432_v13, %s3614_s29  ;;  %v1273_v13 = vadd.f32 %v4579_v14, %v4843_v28 }
 0x40f   :  { %v3246_v22 = vpop.f32.mrb[20].mxu0 }
 0x410   :  { %v2447_v34 = vadd.f32 %v3246_v22, %v4843_v28  ;;  %v2441_v38 = vpop.f32.mrb[21].mxu0  ;;  %v1268_v22 = vadd.f32 %v4843_v28, %v4581_v40 }
 0x411   :  { %v2442_v17 = vadd.f32 %v4843_v28, %v2441_v38 }
 0x412   :  { %2526 = vrot.lane.b32.xlu0 %v2447_v34, %s3614_s29 }
 0x413   :  { %2524 = vrot.lane.b32.xlu1 %v2442_v17, %s3614_s29  ;;  %v1283_v17 = vadd.f32 %v4583_v53, %v4843_v28 }
 0x414   :  { %v3249_v35 = vpop.f32.mrb[22].mxu0 }
 0x415   :  { %v2457_v50 = vadd.f32 %v3249_v35, %v4843_v28  ;;  %v2451_v60 = vpop.f32.mrb[23].mxu0  ;;  %v1278_v35 = vadd.f32 %v4843_v28, %v4585_v30 }
 0x416   :  { %v2452_v24 = vadd.f32 %v4843_v28, %v2451_v60 }
 0x417   :  { %2530 = vrot.lane.b32.xlu0 %v2457_v50, %s3614_s29 }
 0x418   :  { %2528 = vrot.lane.b32.xlu1 %v2452_v24, %s3614_s29  ;;  %v3252_v47 = vpop.f32.mrb[24].mxu0  ;;  %v1293_v24 = vadd.f32 %v4587_v43, %v4843_v28 }
 0x419   :  { %v2467_v7 = vadd.f32 %v3252_v47, %v4843_v28  ;;  %v2461_v61 = vpop.f32.mrb[25].mxu0  ;;  %v1288_v47 = vadd.f32 %v4843_v28, %v4589_v44 }
 0x41a   :  { %v2462_v21 = vadd.f32 %v4843_v28, %v2461_v61 }
 0x41b   :  { %2534 = vrot.lane.b32.xlu0 %v2467_v7, %s3614_s29 }
 0x41c   :  { %2532 = vrot.lane.b32.xlu1 %v2462_v21, %s3614_s29  ;;  %v3255_v15 = vpop.f32.mrb[26].mxu0 }
 0x41d   :  { %v2477_v5 = vadd.f32 %v3255_v15, %v4843_v28  ;;  %v2471_v16 = vpop.f32.mrb[27].mxu0 }
 0x41e   :  { %v2472_v25 = vadd.f32 %v4843_v28, %v2471_v16 }
 0x41f   :  { %2538 = vrot.lane.b32.xlu0 %v2477_v5, %s3614_s29 }
 0x420   :  { %2536 = vrot.lane.b32.xlu1 %v2472_v25, %s3614_s29 }
 0x422   :  { %v3258_v2 = vpop.f32.mrb[28].mxu0 }
 0x423   :  { %v2487_v57 = vadd.f32 %v3258_v2, %v4843_v28  ;;  %v2481_v9 = vpop.f32.mrb[29].mxu0 }
 0x424   :  { %v2482_v18 = vadd.f32 %v4843_v28, %v2481_v9 }
 0x425   :  { %2542 = vrot.lane.b32.xlu0 %v2487_v57, %s3614_s29 }
 0x426   :  { %2540 = vrot.lane.b32.xlu1 %v2482_v18, %s3614_s29  ;;  %v3261_v3 = vpop.f32.mrb[30].mxu0 }
 0x427   :  { %v2497_v6 = vadd.f32 %v3261_v3, %v4843_v28  ;;  %v2491_v20 = vpop.f32.mrb[31].mxu0 }
 0x428   :  { %v2492_v59 = vadd.f32 %v4843_v28, %v2491_v20 }
 0x429   :  { %2546 = vrot.lane.b32.xlu0 %v2497_v6, %s3614_s29 }
 0x42a   :  { %2544 = vrot.lane.b32.xlu1 %v2492_v59, %s3614_s29 }
 0x474   :  { %v2519_v23 = vpop.permute.xlu0 %2518 }
 0x475   :  { %v2565_v54 = vsel %vm673_vm3, %v1223_v48, %v2519_v23  ;;  %v2517_v32 = vpop.permute.xlu1 %2516 }
 0x476   :  { %2581 = vst [vmem:[#allocation2 + $0x8] sm:$0xff] %v2565_v54  ;;  %v2564_v39 = vsel %vm673_vm3, %v1218_v31, %v2517_v32 }
 0x477   :  { %2580 = vst [vmem:[#allocation2] sm:$0xff] %v2564_v39 }
 0x47e   :  { %v2523_v37 = vpop.permute.xlu0 %2522 }
 0x47f   :  { %v2567_v56 = vsel %vm673_vm3, %v1233_v8, %v2523_v37  ;;  %v2521_v26 = vpop.permute.xlu1 %2520 }
 0x480   :  { %2583 = vst [vmem:[#allocation2 + $0x18] sm:$0xff] %v2567_v56  ;;  %v2566_v29 = vsel %vm673_vm3, %v1228_v4, %v2521_v26 }
 0x481   :  { %2582 = vst [vmem:[#allocation2 + $0x10] sm:$0xff] %v2566_v29 }
 0x484   :  { %v2527_v58 = vpop.permute.xlu0 %2526 }
 0x485   :  { %v2569_v19 = vsel %vm673_vm3, %v1243_v42, %v2527_v58  ;;  %v2525_v11 = vpop.permute.xlu1 %2524 }
 0x486   :  { %2585 = vst [vmem:[#allocation2 + $0x28] sm:$0xff] %v2569_v19  ;;  %v2568_v63 = vsel %vm673_vm3, %v1238_v0, %v2525_v11 }
 0x487   :  { %2584 = vst [vmem:[#allocation2 + $0x20] sm:$0xff] %v2568_v63 }
 0x489   :  { %v2531_v49 = vpop.permute.xlu0 %2530 }
 0x48a   :  { %v2571_v62 = vsel %vm673_vm3, %v1253_v51, %v2531_v49  ;;  %v2529_v36 = vpop.permute.xlu1 %2528 }
 0x48b   :  { %2587 = vst [vmem:[#allocation2 + $0x38] sm:$0xff] %v2571_v62  ;;  %v2570_v46 = vsel %vm673_vm3, %v1248_v1, %v2529_v36 }
 0x48c   :  { %2586 = vst [vmem:[#allocation2 + $0x30] sm:$0xff] %v2570_v46 }
 0x48d   :  { %v2535_v55 = vpop.permute.xlu0 %2534 }
 0x48e   :  { %v2573_v33 = vsel %vm673_vm3, %v1263_v41, %v2535_v55  ;;  %v2533_v52 = vpop.permute.xlu1 %2532 }
 0x48f   :  { %2589 = vst [vmem:[#allocation2 + $0x48] sm:$0xff] %v2573_v33  ;;  %v2572_v12 = vsel %vm673_vm3, %v1258_v45, %v2533_v52 }
 0x490   :  { %2588 = vst [vmem:[#allocation2 + $0x40] sm:$0xff] %v2572_v12 }
 0x491   :  { %v2539_v34 = vpop.permute.xlu0 %2538 }
 0x492   :  { %v2575_v10 = vsel %vm673_vm3, %v1273_v13, %v2539_v34  ;;  %v2537_v38 = vpop.permute.xlu1 %2536 }
 0x493   :  { %2591 = vst [vmem:[#allocation2 + $0x58] sm:$0xff] %v2575_v10  ;;  %v2574_v27 = vsel %vm673_vm3, %v1268_v22, %v2537_v38 }
 0x494   :  { %2590 = vst [vmem:[#allocation2 + $0x50] sm:$0xff] %v2574_v27 }
 0x497   :  { %v2543_v50 = vpop.permute.xlu0 %2542 }
 0x498   :  { %v2577_v14 = vsel %vm673_vm3, %v1283_v17, %v2543_v50  ;;  %v2541_v60 = vpop.permute.xlu1 %2540 }
 0x499   :  { %2593 = vst [vmem:[#allocation2 + $0x68] sm:$0xff] %v2577_v14  ;;  %v2576_v40 = vsel %vm673_vm3, %v1278_v35, %v2541_v60 }
 0x49a   :  { %2592 = vst [vmem:[#allocation2 + $0x60] sm:$0xff] %v2576_v40 }
 0x49b   :  { %v2547_v53 = vpop.permute.xlu0 %2546 }
 0x49c   :  { %v2579_v7 = vsel %vm673_vm3, %v1293_v24, %v2547_v53  ;;  %v2545_v30 = vpop.permute.xlu1 %2544 }
 0x49d   :  { %2595 = vst [vmem:[#allocation2 + $0x78] sm:$0xff] %v2579_v7  ;;  %v2578_v61 = vsel %vm673_vm3, %v1288_v47, %v2545_v30 }
 0x49e   :  { %2594 = vst [vmem:[#allocation2 + $0x70] sm:$0xff] %v2578_v61 }
 0x49f   :  { %3596 = shalt.err (!%p3593_p4)
}
 0x4a0   :  { %s3597_s2 = scalar_lea.hbm %s4945_s8, 2048 }
 0x4a1   :  { %p3598_p5 = scmp.ne.s32.totalorder %s4945_s8, %s3597_s2  ;;  %p3601_p6 = scmp.lt.u32.totalorder %s3597_s2, %s4945_s8 }
 0x4a3   :  { %p3603_p7 = pnand %p3601_p6, %p3598_p5 }
 0x4a5   :  { %3606 = shalt.err (!%p3603_p7)
}
 0x4a6   :  { %s3616_s10 = smov 128   ;;  %s3617_s11 = smov 8  }
 0x4a7   :  { %2607 = dma.vmem_to_hbm [thread:$0]  %s2602_s24, 2048, %s4945_s8, [#allocation3], %s3616_s10, %s3616_s10, %s3617_s11  }
 0x4a8   :  { %3607 = dma.done.wait [#allocation3], 2048  }
 0x4a9   :  { %3608 = vsyncadd [#allocation3], 4294965248 }
 0x4aa   :  { %2611 = vsyncpa [#allocation3], 1 }

</bundles_post_ra>
